<compile_context>
chip_gen: v5e
topology: v5e:2x2
jax: 0.10.0
libtpu: 0.0.40
codegen_flags: <defaults>
</compile_context>

<pallas_src>
import functools

import jax
import jax.numpy as jnp
from jax import lax
from jax.experimental import pallas as pl
from jax.experimental.pallas import tpu as pltpu


def _basic_block_kernel(xp_ref, w1_ref, s1_ref, b1_ref,
                        w2_ref, s2_ref, b2_ref, out_ref,
                        *, BN, H, W, Cin, Cout):
    """BN images per grid step, lane-dense (row, W*C) layout, banded weights.

    xp_ref  : (BN, H+2, W*Cin)    bf16  H-padded input, (w, c) flat on lanes
    w1_ref  : (3, W*Cin, W*Cout)  bf16  conv1 banded weights (one per kh)
    s1/b1   : (1, W*Cout)         f32   folded BN1 scale / bias (tiled over W)
    w2_ref  : (3, W*Cout, W*Cout) bf16  conv2 banded weights
    s2/b2   : (1, W*Cout)         f32   folded BN2 scale / bias
    out_ref : (BN, H, W*Cout)     f32
    """
    WCi = W * Cin
    WCo = W * Cout
    M = BN * H

    # ---- conv1: 3 banded matmuls, bf16 operands sliced straight from the
    # ref (sublane shift only; no lane-offset slices, no f32 widen), f32 acc.
    acc = None
    for kh in range(3):
        patch = xp_ref[:, kh:kh + H, :].reshape(M, WCi)
        d = jnp.dot(patch, w1_ref[kh], preferred_element_type=jnp.float32)
        acc = d if acc is None else acc + d

    # ---- bn1 + relu (f32 epilogue on the VPU) ----
    y1 = jnp.maximum(acc * s1_ref[...] + b1_ref[...], 0.0)

    # ---- H-pad the conv2 input once, in bf16 (single extra rounding of y1;
    # only the two halo rows are materialized, the interior is y1 itself). ----
    halo = jnp.zeros((BN, 1, WCo), jnp.bfloat16)
    mid = jnp.concatenate(
        [halo, y1.reshape(BN, H, WCo).astype(jnp.bfloat16), halo], axis=1)

    # ---- conv2: 3 banded matmuls ----
    acc2 = None
    for kh in range(3):
        patch = mid[:, kh:kh + H, :].reshape(M, WCo)
        d = jnp.dot(patch, w2_ref[kh], preferred_element_type=jnp.float32)
        acc2 = d if acc2 is None else acc2 + d

    # ---- bn2 + residual add + relu; the identity is the interior of the
    # already-resident padded input tile (single input stream, one widen). ----
    identity = xp_ref[:, 1:H + 1, :].reshape(M, WCi).astype(jnp.float32)
    out = jnp.maximum(acc2 * s2_ref[...] + b2_ref[...] + identity, 0.0)
    out_ref[...] = out.reshape(BN, H, WCo).astype(out_ref.dtype)


def _fold_bn(bn, eps):
    gamma, beta, mean, var = bn
    scale = gamma / jnp.sqrt(var + eps)
    bias = beta - mean * scale
    return scale.astype(jnp.float32), bias.astype(jnp.float32)


def _banded_taps(w, W):
    """(Cout, Cin, 3, 3) conv weight -> (3, W*Cin, W*Cout) bf16 banded over kh.

    For tap row kh, block (wi, wo) equals w[:, :, kh, wi-wo+1].T when
    |wi - wo| <= 1 and zero otherwise, so 'same' padding along W is encoded in
    the weight: each conv needs only 3 matmuls (one per kh) and the weight is
    ~3/W dense instead of 1/W dense (the old block-diagonal per-tap form).
    """
    taps = jnp.transpose(w, (2, 3, 1, 0)).astype(jnp.float32)   # (3,3,Cin,Cout)
    wi = jnp.arange(W)[:, None]
    wo = jnp.arange(W)[None, :]
    kw = wi - wo + 1                                            # (W, W)
    valid = ((kw >= 0) & (kw <= 2)).astype(jnp.float32)
    banded = taps[:, jnp.clip(kw, 0, 2)]                        # (3,W,W,Cin,Cout)
    banded = banded * valid[None, :, :, None, None]
    banded = jnp.transpose(banded, (0, 1, 3, 2, 4))             # (3,W,Cin,W,Cout)
    Cout, Cin = w.shape[0], w.shape[1]
    return banded.reshape(3, W * Cin, W * Cout).astype(jnp.bfloat16)


def _pick_block_batch(N, H, target_m=128):
    """Images per grid step: aim for M = BN*H >= target_m MXU rows while
    keeping >= 2 grid steps so a 2-TensorCore chip (v7x) can split the grid."""
    divs = [d for d in range(1, N + 1) if N % d == 0]
    cand = [d for d in divs if N // d >= 2] or divs
    for d in cand:
        if d * H >= target_m:
            return d
    return cand[-1]


def basic_block_forward(x_nchw, w1, bn1, w2, bn2, eps=1e-5):
    """x_nchw: (N, Cin, H, W) float32. Returns (N, Cout, H, W) float32."""
    N, Cin, H, W = x_nchw.shape
    Cout = w1.shape[0]
    assert Cin == Cout, "residual add requires inplanes == planes (no downsample)"
    # Banded weights scale as 3*(W*C)^2 bytes; switch layouts before large C.
    assert W * Cin <= 2048, "use a channel-on-lane, spatially tiled layout"
    # TODO(synk): stride>1 / pooling / downsample branches of BasicBlock are not
    # exercised in the default (stride=1, downsample=None) configuration.
    # TODO(synk): for large ResNet stages (56x56x64+) switch to a channel-on-lane
    # layout with spatial row tiling; re-derive tile sizes against v7x's 64 MiB
    # VMEM (not v5e/v6e's 128 MiB).

    WCi, WCo = W * Cin, W * Cout

    s1, b1 = _fold_bn(bn1, eps)
    s2, b2 = _fold_bn(bn2, eps)
    # Tile per-channel scale/bias across W -> lane-dense (1, W*Cout).
    s1t = jnp.tile(s1, W).reshape(1, WCo)
    b1t = jnp.tile(b1, W).reshape(1, WCo)
    s2t = jnp.tile(s2, W).reshape(1, WCo)
    b2t = jnp.tile(b2, W).reshape(1, WCo)

    w1_band = _banded_taps(w1, W)   # (3, W*Cin,  W*Cout) bf16
    w2_band = _banded_taps(w2, W)   # (3, W*Cout, W*Cout) bf16

    # NCHW -> NHWC, pad H by 1 only (W padding lives in the banded weights),
    # flatten (W, C) onto the lane axis, cast to bf16.  XLA fuses
    # transpose+pad+reshape+convert into one producer pass; the kernel reads
    # only this tensor (residual included).
    x_nhwc = jnp.transpose(x_nchw, (0, 2, 3, 1))
    xp = jnp.pad(x_nhwc, ((0, 0), (1, 1), (0, 0), (0, 0)))
    xp = xp.reshape(N, H + 2, WCi).astype(jnp.bfloat16)

    BN = _pick_block_batch(N, H)
    steps = N // BN

    kernel = functools.partial(_basic_block_kernel,
                               BN=BN, H=H, W=W, Cin=Cin, Cout=Cout)

    # MXU FLOPs actually issued (2 convs x 3 banded matmuls of (N*H, WCi, WCo)),
    # not the (smaller) algorithmic conv FLOPs.
    flops = 2 * 2 * 3 * N * H * WCi * WCo
    bytes_accessed = (xp.size * 2                            # bf16 input
                      + N * H * WCo * 4                      # f32 output
                      + (w1_band.size + w2_band.size) * 2    # bf16 weights
                      + 4 * WCo * 4)                         # scales / biases

    out_flat = pl.pallas_call(
        kernel,
        out_shape=jax.ShapeDtypeStruct((N, H, WCo), jnp.float32),
        grid_spec=pltpu.PrefetchScalarGridSpec(
            num_scalar_prefetch=0,
            grid=(steps,),
            in_specs=[
                pl.BlockSpec((BN, H + 2, WCi), lambda n: (n, 0, 0)),
                # Grid-invariant weight/scale inputs (constant index_map): the
                # auto-pipeline only issues their DMA once, not per step.
                pl.BlockSpec((3, WCi, WCo), lambda n: (0, 0, 0)),
                pl.BlockSpec((1, WCo), lambda n: (0, 0)),
                pl.BlockSpec((1, WCo), lambda n: (0, 0)),
                pl.BlockSpec((3, WCo, WCo), lambda n: (0, 0, 0)),
                pl.BlockSpec((1, WCo), lambda n: (0, 0)),
                pl.BlockSpec((1, WCo), lambda n: (0, 0)),
            ],
            out_specs=pl.BlockSpec((BN, H, WCo), lambda n: (n, 0, 0)),
        ),
        compiler_params=pltpu.CompilerParams(
            dimension_semantics=("parallel",),
            vmem_limit_bytes=32 * 1024 * 1024),
        cost_estimate=pl.CostEstimate(
            flops=flops, transcendentals=0, bytes_accessed=bytes_accessed),
    )(xp, w1_band, s1t, b1t, w2_band, s2t, b2t)

    # TODO(synk): when chaining blocks inside a full ResNet, keep the
    # NHWC/lane-dense bf16 layout end-to-end and skip this transpose + f32 cast.
    out = out_flat.reshape(N, H, W, Cout)
    return jnp.transpose(out, (0, 3, 1, 2))   # back to NCHW


def reference_forward(x, w1, bn1, w2, bn2, eps=1e-5):
    """Pure-JAX (lax.conv) reference of the BasicBlock forward, NCHW."""
    def conv(x, w):
        return lax.conv_general_dilated(
            x, w, window_strides=(1, 1), padding=((1, 1), (1, 1)),
            dimension_numbers=('NCHW', 'OIHW', 'NCHW'))

    def bn(x, p):
        gamma, beta, mean, var = (v.reshape(1, -1, 1, 1) for v in p)
        return (x - mean) / jnp.sqrt(var + eps) * gamma + beta

    out = jax.nn.relu(bn(conv(x, w1), bn1))
    out = bn(conv(out, w2), bn2)
    return jax.nn.relu(out + x)


if __name__ == "__main__":
    # BasicBlock(inplanes=8, planes=8, stride=1, downsample=None); W*C = 128.
    # Batch 16 so the kernel blocks 8 images per step (M = 128 matmul rows)
    # while keeping 2 parallel grid steps for a 2-TensorCore chip.
    N, C, H, W = 16, 8, 16, 16
    key = jax.random.PRNGKey(0)
    kx, kw1, kw2, kg1, kb1, kg2, kb2, km1, km2 = jax.random.split(key, 9)

    # Pre-round x / conv weights to bf16-representable values so the
    # mixed-precision kernel and the f32 reference see identical inputs.
    def bf16_grid(v):
        return v.astype(jnp.bfloat16).astype(jnp.float32)

    x = bf16_grid(jax.random.normal(kx, (N, C, H, W), jnp.float32))
    w1 = bf16_grid(jax.random.normal(kw1, (C, C, 3, 3), jnp.float32) * 0.1)
    w2 = bf16_grid(jax.random.normal(kw2, (C, C, 3, 3), jnp.float32) * 0.1)

    # BatchNorm2d params (eval mode): gamma, beta, running_mean, running_var.
    bn1 = (1.0 + 0.1 * jax.random.normal(kg1, (C,), jnp.float32),
           0.1 * jax.random.normal(kb1, (C,), jnp.float32),
           0.1 * jax.random.normal(km1, (C,), jnp.float32),
           jnp.ones((C,), jnp.float32))
    bn2 = (1.0 + 0.1 * jax.random.normal(kg2, (C,), jnp.float32),
           0.1 * jax.random.normal(kb2, (C,), jnp.float32),
           0.1 * jax.random.normal(km2, (C,), jnp.float32),
           jnp.ones((C,), jnp.float32))

    out = jax.block_until_ready(basic_block_forward(x, w1, bn1, w2, bn2))
    ref = reference_forward(x, w1, bn1, w2, bn2)

    assert out.shape == (N, C, H, W)
    err = jnp.max(jnp.abs(out - ref))
    # bf16 matmuls with f32 accumulation -> loosened tolerance.
    assert jnp.allclose(out, ref, atol=5e-2, rtol=5e-2), f"max abs err {err}"
    print("KERNEL_OK")
</pallas_src>

<mosaic_0001>
module attributes {stable_mosaic.version = 11 : i64} {
  func.func @_basic_block_kernel(%arg0: i32, %arg1: memref<8x18x128xbf16, #tpu.memory_space<vmem>>, %arg2: memref<3x128x128xbf16, #tpu.memory_space<vmem>>, %arg3: memref<1x128xf32, #tpu.memory_space<vmem>>, %arg4: memref<1x128xf32, #tpu.memory_space<vmem>>, %arg5: memref<3x128x128xbf16, #tpu.memory_space<vmem>>, %arg6: memref<1x128xf32, #tpu.memory_space<vmem>>, %arg7: memref<1x128xf32, #tpu.memory_space<vmem>>, %arg8: memref<8x16x128xf32, #tpu.memory_space<vmem>>) attributes {dimension_semantics = [#tpu.dimension_semantics<parallel>], iteration_bounds = array<i64: 2>, scalar_prefetch = 0 : i64, scratch_operands = 0 : i64, tpu.core_type = #tpu.core_type<tc>, window_params = [{transform_indices = @transform_0, window_bounds = array<i64: 8, 18, 128>}, {pipeline_mode = #tpu.pipeline_mode<synchronous>, transform_indices = @transform_1, window_bounds = array<i64: 3, 128, 128>}, {pipeline_mode = #tpu.pipeline_mode<synchronous>, transform_indices = @transform_2, window_bounds = array<i64: 1, 128>}, {pipeline_mode = #tpu.pipeline_mode<synchronous>, transform_indices = @transform_3, window_bounds = array<i64: 1, 128>}, {pipeline_mode = #tpu.pipeline_mode<synchronous>, transform_indices = @transform_4, window_bounds = array<i64: 3, 128, 128>}, {pipeline_mode = #tpu.pipeline_mode<synchronous>, transform_indices = @transform_5, window_bounds = array<i64: 1, 128>}, {pipeline_mode = #tpu.pipeline_mode<synchronous>, transform_indices = @transform_6, window_bounds = array<i64: 1, 128>}, {transform_indices = @transform_7, window_bounds = array<i64: 8, 16, 128>}]} {
    %c0 = arith.constant 0 : index
    %c0_0 = arith.constant 0 : index
    %c0_1 = arith.constant 0 : index
    %0 = vector.load %arg1[%c0, %c0_0, %c0_1] : memref<8x18x128xbf16, #tpu.memory_space<vmem>>, vector<8x16x128xbf16>
    %1 = vector.shape_cast %0 : vector<8x16x128xbf16> to vector<128x128xbf16>
    %c0_2 = arith.constant 0 : index
    %c0_3 = arith.constant 0 : index
    %c0_4 = arith.constant 0 : index
    %2 = vector.load %arg2[%c0_2, %c0_3, %c0_4] : memref<3x128x128xbf16, #tpu.memory_space<vmem>>, vector<1x128x128xbf16>
    %3 = vector.shape_cast %2 : vector<1x128x128xbf16> to vector<128x128xbf16>
    %cst = arith.constant dense<0.000000e+00> : vector<128x128xf32>
    %4 = tpu.matmul %1, %3, %cst {dimension_numbers = #tpu.dot_dimension_numbers<[1], [0], [0], [1], [0, 0, 1, 1], [], []>} : vector<128x128xbf16>, vector<128x128xbf16>, vector<128x128xf32> -> vector<128x128xf32>
    %c0_5 = arith.constant 0 : index
    %c1 = arith.constant 1 : index
    %c0_6 = arith.constant 0 : index
    %5 = vector.load %arg1[%c0_5, %c1, %c0_6] : memref<8x18x128xbf16, #tpu.memory_space<vmem>>, vector<8x16x128xbf16>
    %6 = vector.shape_cast %5 : vector<8x16x128xbf16> to vector<128x128xbf16>
    %c1_7 = arith.constant 1 : index
    %c0_8 = arith.constant 0 : index
    %c0_9 = arith.constant 0 : index
    %7 = vector.load %arg2[%c1_7, %c0_8, %c0_9] : memref<3x128x128xbf16, #tpu.memory_space<vmem>>, vector<1x128x128xbf16>
    %8 = vector.shape_cast %7 : vector<1x128x128xbf16> to vector<128x128xbf16>
    %cst_10 = arith.constant dense<0.000000e+00> : vector<128x128xf32>
    %9 = tpu.matmul %6, %8, %cst_10 {dimension_numbers = #tpu.dot_dimension_numbers<[1], [0], [0], [1], [0, 0, 1, 1], [], []>} : vector<128x128xbf16>, vector<128x128xbf16>, vector<128x128xf32> -> vector<128x128xf32>
    %10 = arith.addf %4, %9 : vector<128x128xf32>
    %c0_11 = arith.constant 0 : index
    %c2 = arith.constant 2 : index
    %c0_12 = arith.constant 0 : index
    %11 = vector.load %arg1[%c0_11, %c2, %c0_12] : memref<8x18x128xbf16, #tpu.memory_space<vmem>>, vector<8x16x128xbf16>
    %12 = vector.shape_cast %11 : vector<8x16x128xbf16> to vector<128x128xbf16>
    %c2_13 = arith.constant 2 : index
    %c0_14 = arith.constant 0 : index
    %c0_15 = arith.constant 0 : index
    %13 = vector.load %arg2[%c2_13, %c0_14, %c0_15] : memref<3x128x128xbf16, #tpu.memory_space<vmem>>, vector<1x128x128xbf16>
    %14 = vector.shape_cast %13 : vector<1x128x128xbf16> to vector<128x128xbf16>
    %cst_16 = arith.constant dense<0.000000e+00> : vector<128x128xf32>
    %15 = tpu.matmul %12, %14, %cst_16 {dimension_numbers = #tpu.dot_dimension_numbers<[1], [0], [0], [1], [0, 0, 1, 1], [], []>} : vector<128x128xbf16>, vector<128x128xbf16>, vector<128x128xf32> -> vector<128x128xf32>
    %16 = arith.addf %10, %15 : vector<128x128xf32>
    %c0_17 = arith.constant 0 : index
    %c0_18 = arith.constant 0 : index
    %17 = vector.load %arg3[%c0_17, %c0_18] : memref<1x128xf32, #tpu.memory_space<vmem>>, vector<1x128xf32>
    %18 = vector.broadcast %17 : vector<1x128xf32> to vector<128x128xf32>
    %19 = arith.mulf %16, %18 : vector<128x128xf32>
    %c0_19 = arith.constant 0 : index
    %c0_20 = arith.constant 0 : index
    %20 = vector.load %arg4[%c0_19, %c0_20] : memref<1x128xf32, #tpu.memory_space<vmem>>, vector<1x128xf32>
    %21 = vector.broadcast %20 : vector<1x128xf32> to vector<128x128xf32>
    %22 = arith.addf %19, %21 : vector<128x128xf32>
    %cst_21 = arith.constant 0.000000e+00 : f32
    %23 = vector.broadcast %cst_21 : f32 to vector<128x128xf32>
    %24 = arith.maximumf %22, %23 : vector<128x128xf32>
    %cst_22 = arith.constant 0.000000e+00 : bf16
    %25 = vector.broadcast %cst_22 : bf16 to vector<8x1x128xbf16>
    %26 = vector.shape_cast %24 : vector<128x128xf32> to vector<8x16x128xf32>
    %27 = arith.truncf %26 : vector<8x16x128xf32> to vector<8x16x128xbf16>
    %28 = tpu.concatenate %25, %27, %25 in 1 : vector<8x1x128xbf16>, vector<8x16x128xbf16>, vector<8x1x128xbf16> -> vector<8x18x128xbf16>
    %29 = vector.extract_strided_slice %28 {offsets = [0, 0, 0], sizes = [8, 16, 128], strides = [1, 1, 1]} : vector<8x18x128xbf16> to vector<8x16x128xbf16>
    %30 = vector.shape_cast %29 : vector<8x16x128xbf16> to vector<128x128xbf16>
    %c0_23 = arith.constant 0 : index
    %c0_24 = arith.constant 0 : index
    %c0_25 = arith.constant 0 : index
    %31 = vector.load %arg5[%c0_23, %c0_24, %c0_25] : memref<3x128x128xbf16, #tpu.memory_space<vmem>>, vector<1x128x128xbf16>
    %32 = vector.shape_cast %31 : vector<1x128x128xbf16> to vector<128x128xbf16>
    %cst_26 = arith.constant dense<0.000000e+00> : vector<128x128xf32>
    %33 = tpu.matmul %30, %32, %cst_26 {dimension_numbers = #tpu.dot_dimension_numbers<[1], [0], [0], [1], [0, 0, 1, 1], [], []>} : vector<128x128xbf16>, vector<128x128xbf16>, vector<128x128xf32> -> vector<128x128xf32>
    %34 = vector.extract_strided_slice %28 {offsets = [0, 1, 0], sizes = [8, 16, 128], strides = [1, 1, 1]} : vector<8x18x128xbf16> to vector<8x16x128xbf16>
    %35 = vector.shape_cast %34 : vector<8x16x128xbf16> to vector<128x128xbf16>
    %c1_27 = arith.constant 1 : index
    %c0_28 = arith.constant 0 : index
    %c0_29 = arith.constant 0 : index
    %36 = vector.load %arg5[%c1_27, %c0_28, %c0_29] : memref<3x128x128xbf16, #tpu.memory_space<vmem>>, vector<1x128x128xbf16>
    %37 = vector.shape_cast %36 : vector<1x128x128xbf16> to vector<128x128xbf16>
    %cst_30 = arith.constant dense<0.000000e+00> : vector<128x128xf32>
    %38 = tpu.matmul %35, %37, %cst_30 {dimension_numbers = #tpu.dot_dimension_numbers<[1], [0], [0], [1], [0, 0, 1, 1], [], []>} : vector<128x128xbf16>, vector<128x128xbf16>, vector<128x128xf32> -> vector<128x128xf32>
    %39 = arith.addf %33, %38 : vector<128x128xf32>
    %40 = vector.extract_strided_slice %28 {offsets = [0, 2, 0], sizes = [8, 16, 128], strides = [1, 1, 1]} : vector<8x18x128xbf16> to vector<8x16x128xbf16>
    %41 = vector.shape_cast %40 : vector<8x16x128xbf16> to vector<128x128xbf16>
    %c2_31 = arith.constant 2 : index
    %c0_32 = arith.constant 0 : index
    %c0_33 = arith.constant 0 : index
    %42 = vector.load %arg5[%c2_31, %c0_32, %c0_33] : memref<3x128x128xbf16, #tpu.memory_space<vmem>>, vector<1x128x128xbf16>
    %43 = vector.shape_cast %42 : vector<1x128x128xbf16> to vector<128x128xbf16>
    %cst_34 = arith.constant dense<0.000000e+00> : vector<128x128xf32>
    %44 = tpu.matmul %41, %43, %cst_34 {dimension_numbers = #tpu.dot_dimension_numbers<[1], [0], [0], [1], [0, 0, 1, 1], [], []>} : vector<128x128xbf16>, vector<128x128xbf16>, vector<128x128xf32> -> vector<128x128xf32>
    %45 = arith.addf %39, %44 : vector<128x128xf32>
    %c0_35 = arith.constant 0 : index
    %c1_36 = arith.constant 1 : index
    %c0_37 = arith.constant 0 : index
    %46 = vector.load %arg1[%c0_35, %c1_36, %c0_37] : memref<8x18x128xbf16, #tpu.memory_space<vmem>>, vector<8x16x128xbf16>
    %47 = vector.shape_cast %46 : vector<8x16x128xbf16> to vector<128x128xbf16>
    %48 = arith.extf %47 : vector<128x128xbf16> to vector<128x128xf32>
    %c0_38 = arith.constant 0 : index
    %c0_39 = arith.constant 0 : index
    %49 = vector.load %arg6[%c0_38, %c0_39] : memref<1x128xf32, #tpu.memory_space<vmem>>, vector<1x128xf32>
    %50 = vector.broadcast %49 : vector<1x128xf32> to vector<128x128xf32>
    %51 = arith.mulf %45, %50 : vector<128x128xf32>
    %c0_40 = arith.constant 0 : index
    %c0_41 = arith.constant 0 : index
    %52 = vector.load %arg7[%c0_40, %c0_41] : memref<1x128xf32, #tpu.memory_space<vmem>>, vector<1x128xf32>
    %53 = vector.broadcast %52 : vector<1x128xf32> to vector<128x128xf32>
    %54 = arith.addf %51, %53 : vector<128x128xf32>
    %55 = arith.addf %54, %48 : vector<128x128xf32>
    %cst_42 = arith.constant 0.000000e+00 : f32
    %56 = vector.broadcast %cst_42 : f32 to vector<128x128xf32>
    %57 = arith.maximumf %55, %56 : vector<128x128xf32>
    %58 = vector.shape_cast %57 : vector<128x128xf32> to vector<8x16x128xf32>
    %c0_43 = arith.constant 0 : index
    %c0_44 = arith.constant 0 : index
    %c0_45 = arith.constant 0 : index
    %59 = vector.load %arg8[%c0_43, %c0_44, %c0_45] : memref<8x16x128xf32, #tpu.memory_space<vmem>>, vector<8x16x128xf32>
    tpu.vector_store %arg8[%c0_43, %c0_44, %c0_45], %58 {strides = array<i32>} : memref<8x16x128xf32, #tpu.memory_space<vmem>>, vector<8x16x128xf32>,
    return
  }
  func.func @transform_0(%arg0: i32) -> (i32, i32, i32) {
    %c0_i32 = arith.constant 0 : i32
    %c0_i32_0 = arith.constant 0 : i32
    %c0_i32_1 = arith.constant 0 : i32
    return %arg0, %c0_i32, %c0_i32_0 : i32, i32, i32
  }
  func.func @transform_1(%arg0: i32) -> (i32, i32, i32) {
    %c0_i32 = arith.constant 0 : i32
    %c0_i32_0 = arith.constant 0 : i32
    %c0_i32_1 = arith.constant 0 : i32
    %c0_i32_2 = arith.constant 0 : i32
    return %c0_i32, %c0_i32_0, %c0_i32_1 : i32, i32, i32
  }
  func.func @transform_2(%arg0: i32) -> (i32, i32) {
    %c0_i32 = arith.constant 0 : i32
    %c0_i32_0 = arith.constant 0 : i32
    %c0_i32_1 = arith.constant 0 : i32
    return %c0_i32, %c0_i32_0 : i32, i32
  }
  func.func @transform_3(%arg0: i32) -> (i32, i32) {
    %c0_i32 = arith.constant 0 : i32
    %c0_i32_0 = arith.constant 0 : i32
    %c0_i32_1 = arith.constant 0 : i32
    return %c0_i32, %c0_i32_0 : i32, i32
  }
  func.func @transform_4(%arg0: i32) -> (i32, i32, i32) {
    %c0_i32 = arith.constant 0 : i32
    %c0_i32_0 = arith.constant 0 : i32
    %c0_i32_1 = arith.constant 0 : i32
    %c0_i32_2 = arith.constant 0 : i32
    return %c0_i32, %c0_i32_0, %c0_i32_1 : i32, i32, i32
  }
  func.func @transform_5(%arg0: i32) -> (i32, i32) {
    %c0_i32 = arith.constant 0 : i32
    %c0_i32_0 = arith.constant 0 : i32
    %c0_i32_1 = arith.constant 0 : i32
    return %c0_i32, %c0_i32_0 : i32, i32
  }
  func.func @transform_6(%arg0: i32) -> (i32, i32) {
    %c0_i32 = arith.constant 0 : i32
    %c0_i32_0 = arith.constant 0 : i32
    %c0_i32_1 = arith.constant 0 : i32
    return %c0_i32, %c0_i32_0 : i32, i32
  }
  func.func @transform_7(%arg0: i32) -> (i32, i32, i32) {
    %c0_i32 = arith.constant 0 : i32
    %c0_i32_0 = arith.constant 0 : i32
    %c0_i32_1 = arith.constant 0 : i32
    return %arg0, %c0_i32, %c0_i32_0 : i32, i32, i32
  }
}

</mosaic_0001>

<bundles_post_ra>
// kernel: tpu_custom_call.1
= control target key start
LH: loop header
LB: loop body
LE: loop exit
PB: predicated region body
PF: predicated region fallthrough
CT: control target
= control target key end

     0   :  { %12 = vsyncpa [#allocation3], 0  ;;  %s3144_s0 = inlined_call_operand.vmem [shape: bf16[16,18,128], index: 0, kind: input, shape index: {}]   ;;  %s3145_s1 = inlined_call_operand.vmem [shape: bf16[3,128,128], index: 1, kind: input, shape index: {}]   ;;  %s3146_s2 = inlined_call_operand.vmem [shape: f32[1,128], index: 2, kind: input, shape index: {}]   ;;  %s3147_s3 = inlined_call_operand.vmem [shape: f32[1,128], index: 3, kind: input, shape index: {}]   ;;  %s3148_s4 = inlined_call_operand.hbm [shape: bf16[3,128,128], index: 4, kind: input, shape index: {}]   ;;  %s3149_s5 = inlined_call_operand.vmem [shape: f32[1,128], index: 5, kind: input, shape index: {}]   ;;  %s3150_s6 = inlined_call_operand.vmem [shape: f32[1,128], index: 6, kind: input, shape index: {}]   ;;  %s3151_s7 = inlined_call_operand.hbm [shape: f32[16,16,128], index: 7, kind: output, shape index: {}]  }
   0x1   :  { %13 = vsyncpa [#allocation4], 0 }
   0x2   :  { %15 = vsyncpa [#allocation4 + $0x1], 0  ;;  %s2552_s24 = smov 0   ;;  %s2554_s25 = smov 0  }
   0x3   :  { %s2556_s26 = smov 0   ;;  %s2558_s27 = smov 0  }
   0x4 LB: > { %s2573_s28 = sadd.s32 4294967295, %s2505_s27   ;;  %s1997_s29 = sadd.s32 4294967294, %s2505_s27   ;;  %s2505_s27 = sphi %s2558_s27, %s3163_s27   ;;  %s2501_s26 = sphi %s2556_s26, %s3162_s26   ;;  %s2497_s25 = sphi %s2554_s25, %s3161_s25   ;;  %s2493_s24 = sphi %s2552_s24, %s3160_s24  }
   0x5   : > { %s2577_s30 = sadd.s32 1, %s2505_s27   ;;  %s180_s8 = sadd.s32 1, %s2501_s26 }
   0x6   : > { %s177_s9 = ssub.s32 %s2505_s27, %s2577_s30  ;;  %p190_p0 = scmp.ne.s32.totalorder %s2501_s26, %s2497_s25 }
   0x7   : > { %p178_p1 = scmp.eq.s32.totalorder %s177_s9, 0  ;;  %p191_p2 = scmp.eq.s32.totalorder %s2573_s28, 1 }
   0x8   : > { %p196_p3 = scmp.ne.s32.totalorder %s2497_s25, %s2493_s24  ;;  %p197_p4 = scmp.eq.s32.totalorder %s1997_s29, 1 }
   0x9   : > { %s2588_s10 = scalar_select %p178_p1, %s2501_s26, %s180_s8  }
   0xa   : > { %p2590_p5 = por %p191_p2, %p190_p0  ;;  %p2594_p6 = por %p197_p4, %p196_p3 }
   0xb   : > { %p1998_p7 = scmp.ge.s32.totalorder %s2505_s27, 1  ;;  %p204_p8 = scmp.lt.s32.totalorder %s2505_s27, 3 }
   0xc   : > { %p2365_p9 = scmp.eq.s32.totalorder %s2573_s28, 0  ;;  %s224_s15 = sshll.u32 %s3148_s4, 4  ;;  %s225_s15 = int_to_ptr.hbm [resolvable:$true] %s224_s15 }
   0xd   : > { %p205_p10 = pnand %p1998_p7, %p204_p8  ;;  %s2507_s16 = smov [#allocation2]  }
   0xe   : > { %s226_s17 = sshll.u32 %s2507_s16, 4  ;;  %s2508_s18 = smov 64   ;;  %s227_s17 = int_to_ptr.vmem [resolvable:$true] %s226_s17 }
   0xf   : > { %p2357_p11 = pneg %p205_p10  ;;  %s2509_s19 = smov 4  }
  0x10   : > { %258 = sbr.rel (%p205_p10) target bundleno = 554 (0x22a), region = 48 }
  0x11   : > { %p2358_p12 = pnand %p2365_p9, %p2357_p11 }
  0x13   : > { %2360 = dma.hbm_to_vmem [thread:$0]  (!%p2358_p12), %s225_s15, 3072, %s227_s17, [#allocation3], %s2508_s18, %s2508_s18, %s2509_s19  }
  0x15   : > { %2484 = dma.done.wait (%p2365_p9), [#allocation3], 3072  }
  0x16   : > { %2486 = vsyncadd (%p2365_p9), [#allocation3], 4294964224  ;;  %s2004_s20 = sshll.u32 %s2573_s28, 3  ;;  %v2299_v0 = vld [vmem:[%s3145_s1 + $0x78] sm:$0xff]  ;;  %v2298_v2 = vld [vmem:[%s3145_s1 + $0x70] sm:$0xff]  ;;  %vm867_vm3 = vcmask 1042432  }
  0x17   : > { %p293_p13 = scmp.lt.s32.totalorder %s2004_s20, 15  ;;  %v2291_v1 = vld [vmem:[%s3145_s1 + $0x38] sm:$0xff]  ;;  %2334 = vmatpush.bf16.msra.mxu2 %v2299_v0  ;;  %v2290_v3 = vld [vmem:[%s3145_s1 + $0x30] sm:$0xff]  ;;  %649 = vmatpush.bf16.msra.mxu0 %v2299_v0  ;;  %v2297_v6 = vld [vmem:[%s3145_s1 + $0x68] sm:$0xff]  ;;  %vm341_vm0 = vsmask.f32 3328 }
  0x18   : > { %2342 = vmatpush.bf16.msra.mxu3 %v2291_v1  ;;  %794 = vmatpush.bf16.msra.mxu1 %v2291_v1  ;;  %v2289_v7 = vld [vmem:[%s3145_s1 + $0x28] sm:$0xff]  ;;  %v2296_v12 = vld [vmem:[%s3145_s1 + $0x60] sm:$0xff]  ;;  %v2295_v19 = vld [vmem:[%s3145_s1 + $0x58] sm:$0xff]  ;;  %vm342_vm1 = vsmask.f32 7440  ;;  %vm868_vm4 = vcmask 1046532  }
  0x19   : > { %s3165_s20 = smov (!%p293_p13, %s2004_s20), 15  ;;  %v2288_v13 = vld [vmem:[%s3145_s1 + $0x20] sm:$0xff]  ;;  %v2287_v20 = vld [vmem:[%s3145_s1 + $0x18] sm:$0xff]  ;;  %v2294_v24 = vld [vmem:[%s3145_s1 + $0x50] sm:$0xff]  ;;  %vm1272_vm6 = vcmask 1040384   ;;  %vm1639_vm9 = vcmask 1046528  }
  0x1a   : > { %s2350_s21 = smul.u32 12, %s3165_s20  ;;  %v2286_v25 = vld [vmem:[%s3145_s1 + $0x10] sm:$0xff]  ;;  %vm2663_vm2 = vmor %vm341_vm0, %vm342_vm1  ;;  %v2293_v34 = vld [vmem:[%s3145_s1 + $0x48] sm:$0xff]  ;;  %vm1273_vm7 = vsmask.f32 256  ;;  %s289_s13 = sand.u32 1, %s2497_s25  }
  0x1b   : > { %2335 = vmatpush.bf16.msra.mxu2 %v2298_v2  ;;  %650 = vmatpush.bf16.msra.mxu0 %v2298_v2  ;;  %v2285_v35 = vld [vmem:[%s3145_s1 + $0x8] sm:$0xff]  ;;  %v2292_v40 = vld [vmem:[%s3145_s1 + $0x40] sm:$0xff]  ;;  %v2307_v49 = vld [vmem:[%s3145_s1 + $0xb8] sm:$0xff]  ;;  %vm1307_vm10 = vsmask.f32 7424  ;;  %s2003_s14 = sshll.u32 %s289_s13, 7 }
  0x1c   : > { %s2626_s18 = scalar_lea.vmem %s3144_s0, %s2350_s21  ;;  %2343 = vmatpush.bf16.msra.mxu3 %v2290_v3  ;;  %795 = vmatpush.bf16.msra.mxu1 %v2290_v3  ;;  %v2284_v41 = vld [vmem:[%s3145_s1] sm:$0xff]  ;;  %v2306_v55 = vld [vmem:[%s3145_s1 + $0xb0] sm:$0xff]  ;;  %v2305_v63 = vld [vmem:[%s3145_s1 + $0xa8] sm:$0xff]  ;;  %s3048_s15 = scalar_lea.vmem [#allocation5], %s2003_s14 }
  0x1d   : > { %v309_v4 = vld [vmem:[%s2626_s18 + $0x30] sm:$0xf]  ;;  %v2630_v5 = vld [vmem:[%s2626_s18 + $0x34] sm:$0xf]  ;;  %v2647_v18 = vld [vmem:[%s2626_s18 + $0x38] sm:$0x1] }
  0x1e   : > { %v441_v8 = vshrl.u32 %v309_v4, 16  ;;  %v444_v9 = vshll.u32 %v309_v4, 16  ;;  %v450_v10 = vshll.u32 %v2630_v5, 16  ;;  %v454_v11 = vshrl.u32 %v2630_v5, 16  ;;  %v311_v29 = vld [vmem:[%s2626_s18 + $0x3c] sm:$0xf]  ;;  %vm2833_vm5 = vmor %vm867_vm3, %vm868_vm4 }
  0x1f   : > { %2336 = vmatpush.bf16.msra.mxu2 %v2297_v6  ;;  %651 = vmatpush.bf16.msra.mxu0 %v2297_v6  ;;  %v460_v23 = vshll.u32 %v2647_v18, 16  ;;  %v2668_v31 = vld [vmem:[%s2626_s18 + $0x40] sm:$0xf]  ;;  %v465_v32 = vshrl.u32 %v311_v29, 16  ;;  %v468_v33 = vshll.u32 %v311_v29, 16  ;;  %v2280_v51 = vld [vmem:[%s2626_s18 + $0x30] sm:$0xff]  ;;  %vm2945_vm8 = vmand %vm1272_vm6, %vm1273_vm7 }
  0x20   : > { %v443_v14 = vrot.slane %v441_v8, 4  ;;  %v446_v15 = vrot.slane %v444_v9, 5  ;;  %2344 = vmatpush.bf16.msra.mxu3 %v2289_v7  ;;  %v452_v16 = vrot.slane %v450_v10, 5  ;;  %v456_v17 = vrot.slane %v454_v11, 4  ;;  %796 = vmatpush.bf16.msra.mxu1 %v2289_v7  ;;  %v2695_v44 = vld [vmem:[%s2626_s18 + $0x44] sm:$0x1] }
  0x21   : > { %v462_v28 = vrot.slane %v460_v23, 5  ;;  %v474_v38 = vshll.u32 %v2668_v31, 16  ;;  %v478_v39 = vshrl.u32 %v2668_v31, 16  ;;  %v467_v45 = vrot.slane %v465_v32, 4  ;;  %v313_v56 = vld [vmem:[%s2626_s18 + $0x48] sm:$0xf] }
  0x22   : > { %v447_v21 = vor.u32 %v446_v15, %v443_v14  ;;  %v457_v22 = vor.u32 %v456_v17, %v452_v16  ;;  %v470_v46 = vrot.slane %v468_v33, 5  ;;  %v484_v52 = vshll.u32 %v2695_v44, 16  ;;  %v2707_v57 = vld [vmem:[%s2626_s18 + $0x4c] sm:$0xf]  ;;  %v2304_v7 = vld [vmem:[%s3145_s1 + $0xa0] sm:$0xff]  ;;  %v2302_v23 = vld [vmem:[%s3145_s1 + $0x90] sm:$0xff] }
  0x23   : > { %2337 = vmatpush.bf16.msra.mxu2 %v2296_v12  ;;  %652 = vmatpush.bf16.msra.mxu0 %v2296_v12  ;;  %v476_v47 = vrot.slane %v474_v38, 5  ;;  %v480_v48 = vrot.slane %v478_v39, 4  ;;  %v489_v61 = vshrl.u32 %v313_v56, 16  ;;  %v492_v62 = vshll.u32 %v313_v56, 16  ;;  %v2726_v8 = vld [vmem:[%s2626_s18 + $0x50] sm:$0x1] }
  0x24   : > { %2345 = vmatpush.bf16.msra.mxu3 %v2288_v13  ;;  %797 = vmatpush.bf16.msra.mxu1 %v2288_v13  ;;  %v448_v26 = vrot.slane %v447_v21, 4  ;;  %v458_v27 = vrot.slane %v457_v22, 4  ;;  %v471_v53 = vor.u32 %v470_v46, %v467_v45  ;;  %v486_v58 = vrot.slane %v484_v52, 5  ;;  %v315_v32 = vld [vmem:[%s2626_s18 + $0x54] sm:$0xf]  ;;  %v2301_v45 = vld [vmem:[%s3145_s1 + $0x88] sm:$0xff] }
  0x25   : > { %v481_v54 = vor.u32 %v480_v48, %v476_v47  ;;  %v498_v0 = vshll.u32 %v2707_v57, 16  ;;  %v502_v1 = vshrl.u32 %v2707_v57, 16  ;;  %v491_v4 = vrot.slane %v489_v61, 4  ;;  %v2746_v33 = vld [vmem:[%s2626_s18 + $0x58] sm:$0xf]  ;;  %s2333_s16 = sshll.u32 %s2573_s28, 7 }
  0x26   : > { %v2678_v36 = vsel %vm2663_vm2, %v448_v26, %v452_v16  ;;  %v2682_v37 = vsel %vm2663_vm2, %v458_v27, %v462_v28  ;;  %v472_v59 = vrot.slane %v471_v53, 4  ;;  %v494_v6 = vrot.slane %v492_v62, 5  ;;  %v2303_v16 = vld [vmem:[%s3145_s1 + $0x98] sm:$0xff]  ;;  %s1920_s20 = sshll.u32 %s3048_s15, 4  ;;  %s1907_s28 = scalar_lea.sflag [#allocation4], %s289_s13  ;;  %s1921_s20 = int_to_ptr.vmem [resolvable:$true] %s1920_s20 }
  0x27   : > { %2338 = vmatpush.bf16.msra.mxu2 %v2295_v19  ;;  %653 = vmatpush.bf16.msra.mxu0 %v2295_v19  ;;  %v577_v42 = vunpack.c.l.b16 %v2678_v36  ;;  %v578_v43 = vunpack.c.l.b16 %v2682_v37  ;;  %v482_v60 = vrot.slane %v481_v54, 4  ;;  %v500_v9 = vrot.slane %v498_v0, 5  ;;  %v2281_v19 = vld [vmem:[%s2626_s18 + $0x3c] sm:$0xff]  ;;  %s2459_s9 = scalar_lea.hbm %s3151_s7, 256 }
  0x28   : > { %2346 = vmatpush.bf16.msra.mxu3 %v2287_v20  ;;  %798 = vmatpush.bf16.msra.mxu1 %v2287_v20  ;;  %v2716_v2 = vsel %vm2663_vm2, %v472_v59, %v476_v47  ;;  %v504_v10 = vrot.slane %v502_v1, 4  ;;  %v495_v13 = vor.u32 %v494_v6, %v491_v4  ;;  %v508_v14 = vshll.u32 %v2726_v8, 16  ;;  %v2300_v59 = vld [vmem:[%s3145_s1 + $0x80] sm:$0xff] }
  0x29   : > { %v589_v50 = vpack.c.b16 %v578_v43, %v577_v42  ;;  %v2720_v3 = vsel %vm2663_vm2, %v482_v60, %v486_v58  ;;  %v579_v11 = vunpack.c.l.b16 %v2716_v2  ;;  %v513_v47 = vshrl.u32 %v315_v32, 16 }
  0x2a   : > { %v580_v12 = vunpack.c.l.b16 %v2720_v3  ;;  %v505_v15 = vor.u32 %v504_v10, %v500_v9  ;;  %v496_v20 = vrot.slane %v495_v13, 4  ;;  %v510_v21 = vrot.slane %v508_v14, 5 }
  0x2b   : > { %2339 = vmatpush.bf16.msra.mxu2 %v2294_v24  ;;  %654 = vmatpush.bf16.msra.mxu0 %v2294_v24  ;;  %v301_v24 = vld [vmem:[%s2626_s18] sm:$0xf]  ;;  %v516_v48 = vshll.u32 %v315_v32, 16  ;;  %v526_v52 = vshrl.u32 %v2746_v33, 16  ;;  %v515_v60 = vrot.slane %v513_v47, 4 }
  0x2c   : > { %2347 = vmatpush.bf16.msra.mxu3 %v2286_v25  ;;  %799 = vmatpush.bf16.msra.mxu1 %v2286_v25  ;;  %v590_v17 = vpack.c.b16 %v580_v12, %v579_v11  ;;  %v506_v22 = vrot.slane %v505_v15, 4  ;;  %v2740_v25 = vld [vmem:[%s2626_s18 + $0x4] sm:$0xf]  ;;  %v345_v26 = vshrl.u32 %v301_v24, 16  ;;  %v348_v27 = vshll.u32 %v301_v24, 16  ;;  %v2282_v11 = vld [vmem:[%s2626_s18 + $0x48] sm:$0xff] }
  0x2d   : > { %v354_v28 = vshll.u32 %v2740_v25, 16  ;;  %v358_v29 = vshrl.u32 %v2740_v25, 16  ;;  %v2754_v42 = vsel %vm2663_vm2, %v496_v20, %v500_v9  ;;  %v518_v61 = vrot.slane %v516_v48, 5  ;;  %v303_v15 = vld [vmem:[%s2626_s18 + $0xc] sm:$0xf] }
  0x2e   : > { %v350_v38 = vrot.slane %v348_v27, 5  ;;  %v2758_v43 = vsel %vm2663_vm2, %v506_v22, %v510_v21  ;;  %v581_v56 = vunpack.c.l.b16 %v2754_v42  ;;  %v528_v1 = vrot.slane %v526_v52, 4  ;;  %v2277_v27 = vld [vmem:[%s2626_s18 + $0xc] sm:$0xff] }
  0x2f   : > { %2340 = vmatpush.bf16.msra.mxu2 %v2293_v34  ;;  %655 = vmatpush.bf16.msra.mxu0 %v2293_v34  ;;  %v2749_v34 = vld [vmem:[%s2626_s18 + $0x8] sm:$0x1]  ;;  %v356_v39 = vrot.slane %v354_v28, 5  ;;  %v582_v58 = vunpack.c.l.b16 %v2758_v43  ;;  %v519_v12 = vor.u32 %v518_v61, %v515_v60  ;;  %v843_v60 = vld [vmem:[%s2626_s18] sm:$0xe] }
  0x30   : > { %2348 = vmatpush.bf16.msra.mxu3 %v2285_v35  ;;  %800 = vmatpush.bf16.msra.mxu1 %v2285_v35  ;;  %v347_v35 = vrot.slane %v345_v26, 4  ;;  %v364_v46 = vshll.u32 %v2749_v34, 16  ;;  %v2793_v26 = vld [vmem:[%s2626_s18 + $0x14] sm:$0x1]  ;;  %v305_v61 = vld [vmem:[%s2626_s18 + $0x18] sm:$0xf] }
  0x31   : > { %v591_v10 = vpack.c.b16 %v582_v58, %v581_v56  ;;  %v520_v22 = vrot.slane %v519_v12, 4  ;;  %v2283_v58 = vld [vmem:[%s2626_s18 + $0x54] sm:$0xff]  ;;  %v2828_v12 = vld [vmem:[%s2626_s18 + $0x20] sm:$0x1] }
  0x32   : > { %v366_v53 = vrot.slane %v364_v46, 5  ;;  %v889_v30 = vrot.slane %v2828_v12, 5 }
  0x33   : > { %2341 = vmatpush.bf16.msra.mxu2 %v2292_v40  ;;  %656 = vmatpush.bf16.msra.mxu0 %v2292_v40  ;;  %v360_v40 = vrot.slane %v358_v29, 4 }
  0x34   : > { %2349 = vmatpush.bf16.msra.mxu3 %v2284_v41  ;;  %801 = vmatpush.bf16.msra.mxu1 %v2284_v41  ;;  %v2276_v41 = vld [vmem:[%s2626_s18] sm:$0xff] }
  0x36   : > { %677 = vmatmul.bf16.vlgmr.msra.gmra.mxu2 %v589_v50  ;;  %v361_v50 = vor.u32 %v360_v40, %v356_v39 }
  0x37   : > { %1023 = vmatpush.bf16.msrb.mxu2 %v2307_v49  ;;  %822 = vmatmul.bf16.vlgmr.msra.gmra.mxu3 %v2280_v51  ;;  %v351_v49 = vor.u32 %v350_v38, %v347_v35  ;;  %v522_v51 = vshll.u32 %v2746_v33, 16  ;;  %v388_v38 = vshll.u32 %v2793_v26, 16 }
  0x38   : > { %802 = vmatmul.bf16.vlgmr.msra.gmra.mxu1 %v2276_v41 }
  0x39   : > { %v352_v54 = vrot.slane %v351_v49, 4  ;;  %v524_v0 = vrot.slane %v522_v51, 5  ;;  %v390_v41 = vrot.slane %v388_v38, 5 }
  0x3b   : > { %1024 = vmatpush.bf16.msrb.mxu2 %v2306_v55  ;;  %v362_v55 = vrot.slane %v361_v50, 4  ;;  %v2773_v62 = vsel %vm2663_vm2, %v352_v54, %v356_v39  ;;  %v529_v13 = vor.u32 %v528_v1, %v524_v0  ;;  %v393_v1 = vshrl.u32 %v305_v61, 16 }
  0x3c   : > { %v569_v4 = vunpack.c.l.b16 %v2773_v62 }
  0x3f   : > { %1025 = vmatpush.bf16.msrb.mxu2 %v2305_v63  ;;  %v2777_v63 = vsel %vm2663_vm2, %v362_v55, %v366_v53 }
  0x40   : > { %v570_v6 = vunpack.c.l.b16 %v2777_v63 }
  0x42   : > { %v585_v9 = vpack.c.b16 %v570_v6, %v569_v4  ;;  %v396_v4 = vshll.u32 %v305_v61, 16 }
  0x43   : > { %1026 = vmatpush.bf16.msrb.mxu2 %v2304_v7  ;;  %v2782_v7 = vld [vmem:[%s2626_s18 + $0x5c] sm:$0x1] }
  0x44   : > { %v532_v14 = vshll.u32 %v2782_v7, 16  ;;  %657 = vmatmul.bf16.vlgmr.msra.gmra.mxu0 %v585_v9 }
  0x46   : > { %682 = vmatmul.bf16.gmra.mxu2 %v590_v17  ;;  %v369_v17 = vshrl.u32 %v303_v15, 16  ;;  %v534_v24 = vrot.slane %v532_v14, 5  ;;  %v395_v14 = vrot.slane %v393_v1, 4  ;;  %v882_v1 = vrot.slane %v2793_v26, 5 }
  0x47   : > { %1027 = vmatpush.bf16.msrb.mxu2 %v2303_v16  ;;  %827 = vmatmul.bf16.gmra.mxu3 %v2281_v19  ;;  %v2788_v16 = vld [vmem:[%s2626_s18 + $0x10] sm:$0xf]  ;;  %v372_v19 = vshll.u32 %v303_v15, 16  ;;  %v398_v15 = vrot.slane %v396_v4, 5  ;;  %v336_v4 = vld [vmem:[%s2626_s18 + $0x2c] sm:$0x1] }
  0x48   : > { %v378_v20 = vshll.u32 %v2788_v16, 16  ;;  %v382_v21 = vshrl.u32 %v2788_v16, 16  ;;  %v371_v28 = vrot.slane %v369_v17, 4  ;;  %807 = vmatmul.bf16.gmra.mxu1 %v2277_v27 }
  0x49   : > { %v374_v29 = vrot.slane %v372_v19, 5 }
  0x4a   : > { %v380_v32 = vrot.slane %v378_v20, 5  ;;  %v384_v35 = vrot.slane %v382_v21, 4  ;;  %v412_v21 = vshll.u32 %v2828_v12, 16  ;;  %v2327_v20 = vld [vmem:[#allocation2 + $0x98] sm:$0xff] }
  0x4b   : > { %1028 = vmatpush.bf16.msrb.mxu2 %v2302_v23  ;;  %v530_v23 = vrot.slane %v529_v13, 4  ;;  %v375_v39 = vor.u32 %v374_v29, %v371_v28  ;;  %v2278_v13 = vld [vmem:[%s2626_s18 + $0x18] sm:$0xff] }
  0x4c   : > { %v385_v40 = vor.u32 %v384_v35, %v380_v32 }
  0x4d   : > { %v2803_v46 = vsel %vm2663_vm2, %v530_v23, %v534_v24  ;;  %v376_v47 = vrot.slane %v375_v39, 4 }
  0x4e   : > { %v386_v48 = vrot.slane %v385_v40, 4  ;;  %v584_v52 = vunpack.c.l.b16 %v2803_v46 }
  0x4f   : > { %1029 = vmatpush.bf16.msrb.mxu2 %v2301_v45  ;;  %v2799_v45 = vsel %vm2663_vm2, %v520_v22, %v524_v0  ;;  %v2807_v49 = vsel %vm2663_vm2, %v376_v47, %v380_v32  ;;  %v2822_v0 = vld [vmem:[%s2626_s18 + $0x1c] sm:$0xf]  ;;  %v399_v22 = vor.u32 %v398_v15, %v395_v14 }
  0x50   : > { %v2811_v50 = vsel %vm2663_vm2, %v386_v48, %v390_v41  ;;  %v583_v51 = vunpack.c.l.b16 %v2799_v45  ;;  %v571_v53 = vunpack.c.l.b16 %v2807_v49  ;;  %v402_v6 = vshll.u32 %v2822_v0, 16 }
  0x51   : > { %v572_v54 = vunpack.c.l.b16 %v2811_v50  ;;  %v406_v9 = vshrl.u32 %v2822_v0, 16  ;;  %v400_v28 = vrot.slane %v399_v22, 4 }
  0x52   : > { %v592_v56 = vpack.c.b16 %v584_v52, %v583_v51  ;;  %v404_v17 = vrot.slane %v402_v6, 5  ;;  %v879_v51 = vrot.slane %v2788_v16, 5  ;;  %v844_v52 = vld [vmem:[%s2626_s18 + $0xc] sm:$0xe]  ;;  %v2279_v6 = vld [vmem:[%s2626_s18 + $0x24] sm:$0xff]  ;;  %v436_v16 = vshll.u32 %v336_v4, 16 }
  0x53   : > { %1030 = vmatpush.bf16.msrb.mxu2 %v2300_v59  ;;  %v586_v55 = vpack.c.b16 %v572_v54, %v571_v53  ;;  %v872_v59 = vrot.slane %v2740_v25, 5  ;;  %v875_v25 = vrot.slane %v2749_v34, 5  ;;  %v408_v19 = vrot.slane %v406_v9, 4  ;;  %v307_v53 = vld [vmem:[%s2626_s18 + $0x24] sm:$0xf] }
  0x54   : > { %v414_v34 = vrot.slane %v412_v21, 5  ;;  %v2844_v32 = vsel %vm2663_vm2, %v400_v28, %v404_v17  ;;  %v308_v54 = vld [vmem:[%s2626_s18 + $0x28] sm:$0xf]  ;;  %v881_v61 = vrot.slane %v879_v51, 4  ;;  %v438_v15 = vrot.slane %v436_v16, 5 }
  0x55   : > { %662 = vmatmul.bf16.gmra.mxu0 %v586_v55  ;;  %v409_v23 = vor.u32 %v408_v19, %v404_v17  ;;  %v573_v40 = vunpack.c.l.b16 %v2844_v32  ;;  %v417_v55 = vshrl.u32 %v307_v53, 16  ;;  %v903_v16 = vrot.slane %v2647_v18, 5  ;;  %v2323_v18 = vld [vmem:[#allocation2 + $0x78] sm:$0xff] }
  0x56   : > { %687 = vmatmul.bf16.gmra.mxu2 %v591_v10  ;;  %v2118_v10 = vrot.slane %v843_v60, 9  ;;  %v2119_v60 = vrot.slane %v844_v52, 9  ;;  %v883_v19 = vsel %vm2833_vm5, %v881_v61, %v882_v1  ;;  %1477 = vmatpush.bf16.msrb.mxu3 %v2323_v18 }
  0x57   : > { %832 = vmatmul.bf16.gmra.mxu3 %v2282_v11  ;;  %v874_v11 = vrot.slane %v872_v59, 4  ;;  %v410_v29 = vrot.slane %v409_v23, 4  ;;  %v419_v9 = vrot.slane %v417_v55, 4 }
  0x58   : > { %812 = vmatmul.bf16.gmra.mxu1 %v2278_v13  ;;  %v873_v24 = vsel %vm2833_vm5, %v2118_v10, %v872_v59  ;;  %v430_v59 = vshrl.u32 %v308_v54, 16  ;;  %v880_v17 = vsel %vm2833_vm5, %v2119_v60, %v879_v51  ;;  %v896_v60 = vrot.slane %v336_v4, 5 }
  0x59   : > { %v876_v27 = vsel %vm2833_vm5, %v874_v11, %v875_v25  ;;  %v2848_v35 = vsel %vm2663_vm2, %v410_v29, %v414_v34  ;;  %v943_v38 = vunpack.c.l.b16 %v873_v24  ;;  %v945_v34 = vunpack.c.l.b16 %v880_v17 }
  0x5a   : > { %v944_v39 = vunpack.c.l.b16 %v876_v27  ;;  %v574_v41 = vunpack.c.l.b16 %v2848_v35  ;;  %v432_v25 = vrot.slane %v430_v59, 4  ;;  %v946_v24 = vunpack.c.l.b16 %v883_v19 }
  0x5b   : > { %v907_v19 = vrot.slane %v2668_v31, 5 }
  0x5c   : > { %v587_v47 = vpack.c.b16 %v574_v41, %v573_v40  ;;  %v959_v48 = vpack.c.b16 %v944_v39, %v943_v38  ;;  %v960_v38 = vpack.c.b16 %v946_v24, %v945_v34  ;;  %v886_v39 = vrot.slane %v2822_v0, 5  ;;  %v845_v40 = vld [vmem:[%s2626_s18 + $0x18] sm:$0xe] }
  0x5d   : > { %v2120_v41 = vrot.slane %v845_v40, 9  ;;  %v910_v34 = vrot.slane %v2695_v44, 5  ;;  %v2315_v40 = vld [vmem:[#allocation2 + $0x38] sm:$0xff]  ;;  %v2322_v44 = vld [vmem:[#allocation2 + $0x70] sm:$0xff] }
  0x5e   : > { %1574 = vmatpush.bf16.msrb.mxu0 %v2315_v40  ;;  %1478 = vmatpush.bf16.msrb.mxu3 %v2322_v44  ;;  %v2308_v44 = vld [vmem:[#allocation2] sm:$0xff] }
  0x65   : > { %667 = vmatmul.bf16.gmra.mxu0 %v587_v47  ;;  %v888_v47 = vrot.slane %v886_v39, 4 }
  0x66   : > { %692 = vmatmul.bf16.gmra.mxu2 %v592_v56  ;;  %v420_v56 = vshll.u32 %v307_v53, 16 }
  0x67   : > { %837 = vmatmul.bf16.gmra.mxu3 %v2283_v58  ;;  %v426_v58 = vshll.u32 %v308_v54, 16  ;;  %v890_v51 = vsel %vm2833_vm5, %v888_v47, %v889_v30  ;;  %v849_v47 = vld [vmem:[%s2626_s18 + $0x48] sm:$0xe]  ;;  %v2331_v30 = vld [vmem:[#allocation2 + $0xb8] sm:$0xff] }
  0x68   : > { %v422_v10 = vrot.slane %v420_v56, 5  ;;  %817 = vmatmul.bf16.gmra.mxu1 %v2279_v6  ;;  %v948_v53 = vunpack.c.l.b16 %v890_v51  ;;  %v893_v56 = vrot.slane %v308_v54, 5 }
  0x69   : > { %v428_v11 = vrot.slane %v426_v58, 5  ;;  %v846_v58 = vld [vmem:[%s2626_s18 + $0x24] sm:$0xe]  ;;  %1737 = vmatpush.bf16.msrb.mxu1 %v2331_v30  ;;  %v2317_v30 = vld [vmem:[#allocation2 + $0x48] sm:$0xff] }
  0x6a   : > { %v423_v13 = vor.u32 %v422_v10, %v419_v9  ;;  %v2121_v0 = vrot.slane %v846_v58, 9  ;;  %v895_v59 = vrot.slane %v893_v56, 4  ;;  %v900_v10 = vrot.slane %v2630_v5, 5  ;;  %v2330_v58 = vld [vmem:[#allocation2 + $0xb0] sm:$0xff] }
  0x6b   : > { %v433_v14 = vor.u32 %v432_v25, %v428_v11 }
  0x6c   : > { %v424_v21 = vrot.slane %v423_v13, 4  ;;  %v894_v61 = vsel %vm2833_vm5, %v2121_v0, %v893_v56  ;;  %v897_v12 = vsel %vm2833_vm5, %v895_v59, %v896_v60  ;;  %v902_v25 = vrot.slane %v900_v10, 4  ;;  %v2321_v56 = vld [vmem:[#allocation2 + $0x68] sm:$0xff] }
  0x6d   : > { %v434_v26 = vrot.slane %v433_v14, 4  ;;  %v949_v1 = vunpack.c.l.b16 %v894_v61  ;;  %v950_v6 = vunpack.c.l.b16 %v897_v12  ;;  %1479 = vmatpush.bf16.msrb.mxu3 %v2321_v56  ;;  %1738 = vmatpush.bf16.msrb.mxu1 %v2330_v58  ;;  %v2313_v12 = vld [vmem:[#allocation2 + $0x28] sm:$0xff]  ;;  %v2316_v56 = vld [vmem:[#allocation2 + $0x40] sm:$0xff] }
  0x6e   : > { %v2865_v22 = vsel %vm2663_vm2, %v424_v21, %v428_v11  ;;  %v847_v11 = vld [vmem:[%s2626_s18 + $0x30] sm:$0xe]  ;;  %v904_v13 = vsel %vm2833_vm5, %v902_v25, %v903_v16  ;;  %v848_v21 = vld [vmem:[%s2626_s18 + $0x3c] sm:$0xe]  ;;  %v924_v25 = vrot.slane %v2782_v7, 5 }
  0x6f   : > { %v2869_v23 = vsel %vm2663_vm2, %v434_v26, %v438_v15  ;;  %v575_v27 = vunpack.c.l.b16 %v2865_v22  ;;  %v962_v9 = vpack.c.b16 %v950_v6, %v949_v1  ;;  %v2122_v54 = vrot.slane %v847_v11, 9  ;;  %v2320_v1 = vld [vmem:[#allocation2 + $0x60] sm:$0xff]  ;;  %v2329_v6 = vld [vmem:[#allocation2 + $0xa8] sm:$0xff]  ;;  %v2311_v7 = vld [vmem:[#allocation2 + $0x18] sm:$0xff] }
  0x70   : > { %v576_v28 = vunpack.c.l.b16 %v2869_v23  ;;  %v952_v15 = vunpack.c.l.b16 %v904_v13  ;;  %v2123_v5 = vrot.slane %v848_v21, 9  ;;  %v909_v26 = vrot.slane %v907_v19, 4  ;;  %v2319_v21 = vld [vmem:[#allocation2 + $0x58] sm:$0xff] }
  0x71   : > { %v901_v4 = vsel %vm2833_vm5, %v2122_v54, %v900_v10  ;;  %v850_v10 = vld [vmem:[%s2626_s18 + $0x54] sm:$0xe]  ;;  %1480 = vmatpush.bf16.msrb.mxu3 %v2320_v1  ;;  %1739 = vmatpush.bf16.msrb.mxu1 %v2329_v6  ;;  %s1919_s18 = scalar_lea.hbm %s3151_s7, %s2333_s16 }
  0x72   : > { %v588_v29 = vpack.c.b16 %v576_v28, %v575_v27  ;;  %v951_v14 = vunpack.c.l.b16 %v901_v4  ;;  %v908_v27 = vsel %vm2833_vm5, %v2123_v5, %v907_v19  ;;  %v911_v28 = vsel %vm2833_vm5, %v909_v26, %v910_v34  ;;  %v2312_v19 = vld [vmem:[#allocation2 + $0x20] sm:$0xff]  ;;  %s1922_s22 = sshll.u32 %s1919_s18, 4  ;;  %s1923_s22 = int_to_ptr.hbm [resolvable:$true] %s1922_s22 }
  0x73   : > { %v2125_v11 = vrot.slane %v850_v10, 9  ;;  %v2328_v5 = vld [vmem:[#allocation2 + $0xa0] sm:$0xff]  ;;  %s2453_s23 = sshra.s32 %s1923_s22, 4  ;;  %s2454_s23 = int_to_ptr.hbm [resolvable:$true] %s2453_s23 }
  0x74   : > { %v963_v17 = vpack.c.b16 %v952_v15, %v951_v14  ;;  %s2455_s21 = scalar_lea.hbm %s2454_s23, 128  ;;  %p2460_p3 = scmp.lt.s32.totalorder %s2454_s23, %s3151_s7 }
  0x75   : > { %672 = vmatmul.bf16.gmra.mxu0 %v588_v29  ;;  %v953_v29 = vunpack.c.l.b16 %v908_v27  ;;  %1481 = vmatpush.bf16.msrb.mxu3 %v2319_v21  ;;  %v2310_v27 = vld [vmem:[#allocation2 + $0x10] sm:$0xff]  ;;  %p2456_p0 = scmp.ne.s32.totalorder %s2454_s23, %s2455_s21  ;;  %p2461_p4 = scmp.lt.s32.totalorder %s2459_s9, %s2455_s21 }
  0x76   : > { %1031 = vmatmul.bf16.vlgmr.msrb.gmra.mxu2 %v959_v48  ;;  %v887_v48 = vsel %vm2833_vm5, %v2120_v41, %v886_v39  ;;  %v914_v41 = vrot.slane %v2707_v57, 5  ;;  %1740 = vmatpush.bf16.msrb.mxu1 %v2328_v5 }
  0x77   : > { %v947_v52 = vunpack.c.l.b16 %v887_v48  ;;  %v2124_v48 = vrot.slane %v849_v47, 9  ;;  %v2325_v47 = vld [vmem:[#allocation2 + $0x88] sm:$0xff]  ;;  %p2457_p1 = pnand %p2456_p0, %p2590_p5  ;;  %p2462_p7 = por %p2461_p4, %p2460_p3 }
  0x78   : > { %v916_v51 = vrot.slane %v914_v41, 4 }
  0x79   : > { %v961_v55 = vpack.c.b16 %v948_v53, %v947_v52  ;;  %v917_v52 = vrot.slane %v2726_v8, 5  ;;  %v915_v57 = vsel %vm2833_vm5, %v2124_v48, %v914_v41  ;;  %v2324_v48 = vld [vmem:[#allocation2 + $0x80] sm:$0xff]  ;;  %p2458_p2 = pneg %p2457_p1 }
  0x7a   : > { %v955_v59 = vunpack.c.l.b16 %v915_v57  ;;  %1741 = vmatpush.bf16.msrb.mxu1 %v2327_v20 }
  0x7b   : > { %v918_v0 = vsel %vm2833_vm5, %v916_v51, %v917_v52  ;;  %v2932_v52 = vld [vmem:[%s3146_s2] ss:$0 sm:$0xff]  ;;  %p2463_p8 = pnand %p2462_p7, %p2458_p2 }
  0x7c   : > { %v956_v60 = vunpack.c.l.b16 %v918_v0 }
  0x7e   : > { %v965_v61 = vpack.c.b16 %v956_v60, %v955_v59  ;;  %v2938_v60 = vld [vmem:[%s3147_s3] ss:$0 sm:$0xff] }
  0x86   : > { %1036 = vmatmul.bf16.gmra.mxu2 %v960_v38  ;;  %v954_v38 = vunpack.c.l.b16 %v911_v28  ;;  %v2326_v28 = vld [vmem:[#allocation2 + $0x90] sm:$0xff] }
  0x87   : > { %1742 = vmatpush.bf16.msrb.mxu1 %v2326_v28 }
  0x88   : > { %v964_v39 = vpack.c.b16 %v954_v38, %v953_v29  ;;  %v2318_v29 = vld [vmem:[#allocation2 + $0x50] sm:$0xff]  ;;  %v2309_v38 = vld [vmem:[#allocation2 + $0x8] sm:$0xff] }
  0x89   : > { %1482 = vmatpush.bf16.msrb.mxu3 %v2318_v29 }
  0x8b   : > { %1743 = vmatpush.bf16.msrb.mxu1 %v2325_v47 }
  0x8d   : > { %1483 = vmatpush.bf16.msrb.mxu3 %v2317_v30 }
  0x8f   : > { %1744 = vmatpush.bf16.msrb.mxu1 %v2324_v48 }
  0x91   : > { %1484 = vmatpush.bf16.msrb.mxu3 %v2316_v56 }
  0x96   : > { %1041 = vmatmul.bf16.gmra.mxu2 %v961_v55  ;;  %v2314_v55 = vld [vmem:[#allocation2 + $0x30] sm:$0xff] }
  0x97   : > { %1575 = vmatpush.bf16.msrb.mxu0 %v2314_v55 }
  0x9b   : > { %1576 = vmatpush.bf16.msrb.mxu0 %v2313_v12 }
  0x9f   : > { %1577 = vmatpush.bf16.msrb.mxu0 %v2312_v19 }
  0xa3   : > { %1578 = vmatpush.bf16.msrb.mxu0 %v2311_v7 }
  0xa6   : > { %1046 = vmatmul.bf16.gmra.mxu2 %v962_v9  ;;  %v921_v9 = vrot.slane %v2746_v33, 5 }
  0xa7   : > { %1579 = vmatpush.bf16.msrb.mxu0 %v2310_v27 }
  0xa8   : > { %v923_v54 = vrot.slane %v921_v9, 4  ;;  %v922_v4 = vsel %vm2833_vm5, %v2125_v11, %v921_v9 }
  0xa9   : > { %v957_v14 = vunpack.c.l.b16 %v922_v4 }
  0xaa   : > { %v925_v13 = vsel %vm2833_vm5, %v923_v54, %v924_v25 }
  0xab   : > { %v958_v15 = vunpack.c.l.b16 %v925_v13  ;;  %1580 = vmatpush.bf16.msrb.mxu0 %v2309_v38 }
  0xaf   : > { %1581 = vmatpush.bf16.msrb.mxu0 %v2308_v44 }
  0xb5   : > { %v803_v34 = vpop.f32.mrf.mxu1 }
  0xb6   : > { %1051 = vmatmul.bf16.gmra.mxu2 %v963_v17  ;;  %v966_v17 = vpack.c.b16 %v958_v15, %v957_v14 }
  0xb9   : > { %v2895_v24 = vpop.f32.mrf.mxu2 }
  0xbd   : > { %v805_v41 = vpop.f32.mrf.mxu1 }
  0xc1   : > { %v2901_v31 = vpop.f32.mrf.mxu2  ;;  %v658_v26 = vpop.f32.mrf.mxu0 }
  0xc2   : > { %v804_v51 = vadd.f32 %v803_v34, %v658_v26 }
  0xc5   : > { %v808_v0 = vpop.f32.mrf.mxu1 }
  0xc6   : > { %1056 = vmatmul.bf16.gmra.mxu2 %v964_v39 }
  0xc9   : > { %v2906_v53 = vpop.f32.mrf.mxu2  ;;  %v660_v39 = vpop.f32.mrf.mxu0 }
  0xcd   : > { %v810_v54 = vpop.f32.mrf.mxu1 }
  0xd1   : > { %v2912_v8 = vpop.f32.mrf.mxu2 }
  0xd2   : > { %v663_v57 = vpop.f32.mrf.mxu0 }
  0xd3   : > { %v809_v25 = vadd.f32 %v808_v0, %v663_v57 }
  0xd5   : > { %v813_v20 = vpop.f32.mrf.mxu1 }
  0xd6   : > { %1061 = vmatmul.bf16.gmra.mxu2 %v965_v61  ;;  %v806_v61 = vadd.f32 %v805_v41, %v660_v39 }
  0xd9   : > { %v2917_v16 = vpop.f32.mrf.mxu2 }
  0xda   : > { %v665_v11 = vpop.f32.mrf.mxu0 }
  0xdb   : > { %v811_v27 = vadd.f32 %v810_v54, %v665_v11 }
  0xe1   : > { %v2923_v33 = vpop.f32.mrf.mxu2 }
  0xe2   : > { %v668_v34 = vpop.f32.mrf.mxu0 }
  0xe3   : > { %v814_v56 = vadd.f32 %v813_v20, %v668_v34 }
  0xe6   : > { %1066 = vmatmul.bf16.gmra.mxu2 %v966_v17 }
  0xe9   : > { %v2925_v18 = vpop.f32.mrf.mxu2 }
  0xf1   : > { %v2927_v40 = vpop.f32.mrf.mxu2 }
  0xf9   : > { %v1032_v55 = vpop.f32.mrf.mxu2 }
  0xfa   : > { %v1072_v58 = vadd.f32 %v1032_v55, %v804_v51 }
  0xfc   : > { %v1092_v59 = vmul.f32 %v2932_v52, %v1072_v58 }
  0xfe   : > { %v1112_v12 = vadd.f32 %v2938_v60, %v1092_v59 }
 0x100   : > { %v1128_v9 = vmax.f32 %v1112_v12, 0.0 }
 0x101   : > { %v1034_v1 = vpop.f32.mrf.mxu2 }
 0x102   : > { %v1073_v6 = vadd.f32 %v1034_v1, %v806_v61  ;;  %v1144_v13 = vpack.c.bf16 %v1128_v9, %v1128_v9  ;;  %v670_v9 = vpop.f32.mrf.mxu0 }
 0x104   : > { %v1093_v10 = vmul.f32 %v2932_v52, %v1073_v6  ;;  %v1176_v21 = vunpack.c.l.b16 %v1144_v13 }
 0x106   : > { %v1113_v4 = vadd.f32 %v2938_v60, %v1093_v10  ;;  %v815_v10 = vpop.f32.mrf.mxu1 }
 0x107   : > { %v816_v34 = vadd.f32 %v815_v10, %v670_v9 }
 0x108   : > { %v1129_v14 = vmax.f32 %v1113_v4, 0.0 }
 0x109   : > { %v1037_v15 = vpop.f32.mrf.mxu2 }
 0x10a   : > { %v1145_v17 = vpack.c.bf16 %v1129_v14, %v1129_v14  ;;  %v1074_v19 = vadd.f32 %v1037_v15, %v809_v25 }
 0x10c   : > { %v1177_v5 = vunpack.c.l.b16 %v1145_v17  ;;  %v1094_v26 = vmul.f32 %v2932_v52, %v1074_v19 }
 0x10e   : > { %v1192_v7 = vpack.c.b16 %v1177_v5, %v1176_v21  ;;  %v1114_v28 = vadd.f32 %v2938_v60, %v1094_v26 }
 0x110   : > { %v1201_v29 = vshrl.u32 %v1192_v7, 16  ;;  %v1204_v44 = vshll.u32 %v1192_v7, 16  ;;  %v1130_v30 = vmax.f32 %v1114_v28, 0.0 }
 0x111   : > { %v1039_v38 = vpop.f32.mrf.mxu2 }
 0x112   : > { %v1075_v41 = vadd.f32 %v1039_v38, %v811_v27  ;;  %v1203_v47 = vrot.slane %v1201_v29, 7  ;;  %v1146_v1 = vpack.c.bf16 %v1130_v30, %v1130_v30 }
 0x114   : > { %v1095_v48 = vmul.f32 %v2932_v52, %v1075_v41  ;;  %v1206_v51 = vor.u32 %v1204_v44, %v1203_v47  ;;  %v1283_v55 = vsel %vm2945_vm8, %v1203_v47, 0  ;;  %v1178_v19 = vunpack.c.l.b16 %v1146_v1  ;;  %v673_v47 = vpop.f32.mrf.mxu0  ;;  %v818_v44 = vpop.f32.mrf.mxu1 }
 0x115   : > { %v1641_v61 = vrot.slane %v1283_v55, 1  ;;  %v1316_v12 = vshll.u32 %v1283_v55, 16 }
 0x116   : > { %v1115_v58 = vadd.f32 %v2938_v60, %v1095_v48  ;;  %v1275_v57 = vsel %vm2945_vm8, 0, %v1206_v51 }
 0x117   : > { %v1311_v0 = vshll.u32 %v1275_v57, 16  ;;  %1582 = vmatmul.bf16.vlgmr.msrb.gmra.mxu0 %v1275_v57  ;;  %v1640_v59 = vrot.slane %v1275_v57, 1  ;;  %v1309_v11 = vshrl.u32 %v1275_v57, 16  ;;  %v1318_v17 = vrot.slane %v1316_v12, 1 }
 0x118   : > { %v1131_v6 = vmax.f32 %v1115_v58, 0.0 }
 0x119   : > { %v1313_v54 = vrot.slane %v1311_v0, 1  ;;  %v1042_v25 = vpop.f32.mrf.mxu2  ;;  %v1642_v4 = vsel %vm1639_vm9, %v1640_v59, %v1641_v61  ;;  %v823_v0 = vpop.f32.mrf.mxu3 }
 0x11a   : > { %v1147_v13 = vpack.c.bf16 %v1131_v6, %v1131_v6  ;;  %v1076_v14 = vadd.f32 %v1042_v25, %v814_v56  ;;  %1745 = vmatmul.bf16.vlgmr.msrb.gmra.mxu1 %v1642_v4  ;;  %v819_v56 = vadd.f32 %v818_v44, %v673_v47 }
 0x11b   : > { %v1314_v15 = vor.u32 %v1313_v54, %v1309_v11 }
 0x11c   : > { %v1179_v21 = vunpack.c.l.b16 %v1147_v13  ;;  %v1096_v5 = vmul.f32 %v2932_v52, %v1076_v14 }
 0x11d   : > { %v1319_v26 = vsel %vm1307_vm10, %v1314_v15, %v1318_v17 }
 0x11e   : > { %v1193_v7 = vpack.c.b16 %v1179_v21, %v1178_v19  ;;  %1485 = vmatmul.bf16.vlgmr.msrb.gmra.mxu3 %v1319_v26  ;;  %v1116_v20 = vadd.f32 %v2938_v60, %v1096_v5  ;;  %v675_v5 = vpop.f32.mrf.mxu0  ;;  %v820_v26 = vpop.f32.mrf.mxu1 }
 0x120   : > { %v1208_v27 = vshrl.u32 %v1193_v7, 16  ;;  %v1211_v41 = vshll.u32 %v1193_v7, 16  ;;  %v1132_v30 = vmax.f32 %v1116_v20, 0.0  ;;  %v821_v20 = vadd.f32 %v820_v26, %v675_v5 }
 0x121   : > { %v1044_v28 = vpop.f32.mrf.mxu2 }
 0x122   : > { %v1077_v29 = vadd.f32 %v1044_v28, %v816_v34  ;;  %v1210_v38 = vrot.slane %v1208_v27, 7  ;;  %v1148_v6 = vpack.c.bf16 %v1132_v30, %v1132_v30 }
 0x124   : > { %v1097_v48 = vmul.f32 %v2932_v52, %v1077_v29  ;;  %v1213_v51 = vor.u32 %v1211_v41, %v1210_v38  ;;  %v1284_v55 = vsel %vm2945_vm8, %v1210_v38, 0  ;;  %v1180_v17 = vunpack.c.l.b16 %v1148_v6  ;;  %v825_v29 = vpop.f32.mrf.mxu3 }
 0x125   : > { %v1644_v61 = vrot.slane %v1284_v55, 1  ;;  %v1328_v1 = vshll.u32 %v1284_v55, 16 }
 0x126   : > { %v1117_v58 = vadd.f32 %v2938_v60, %v1097_v48  ;;  %v1276_v57 = vsel %vm2945_vm8, 0, %v1213_v51 }
 0x127   : > { %1587 = vmatmul.bf16.gmra.mxu0 %v1276_v57  ;;  %v1643_v59 = vrot.slane %v1276_v57, 1  ;;  %v1323_v12 = vshll.u32 %v1276_v57, 16  ;;  %v1321_v54 = vshrl.u32 %v1276_v57, 16  ;;  %v1330_v15 = vrot.slane %v1328_v1, 1 }
 0x128   : > { %v1133_v9 = vmax.f32 %v1117_v58, 0.0  ;;  %v824_v1 = vadd.f32 %v823_v0, %v2895_v24  ;;  %v826_v0 = vadd.f32 %v825_v29, %v2901_v31 }
 0x129   : > { %v1047_v10 = vpop.f32.mrf.mxu2  ;;  %v1645_v11 = vsel %vm1639_vm9, %v1643_v59, %v1644_v61  ;;  %v1325_v25 = vrot.slane %v1323_v12, 1 }
 0x12a   : > { %v1149_v4 = vpack.c.bf16 %v1133_v9, %v1133_v9  ;;  %v1078_v13 = vadd.f32 %v1047_v10, %v819_v56  ;;  %1750 = vmatmul.bf16.gmra.mxu1 %v1645_v11 }
 0x12b   : > { %v1326_v14 = vor.u32 %v1325_v25, %v1321_v54 }
 0x12c   : > { %v1181_v19 = vunpack.c.l.b16 %v1149_v4  ;;  %v1098_v21 = vmul.f32 %v2932_v52, %v1078_v13 }
 0x12d   : > { %v1331_v7 = vsel %vm1307_vm10, %v1326_v14, %v1330_v15  ;;  %v828_v14 = vpop.f32.mrf.mxu3 }
 0x12e   : > { %v1194_v34 = vpack.c.b16 %v1181_v19, %v1180_v17  ;;  %1490 = vmatmul.bf16.gmra.mxu3 %v1331_v7  ;;  %v1118_v27 = vadd.f32 %v2938_v60, %v1098_v21 }
 0x130   : > { %v1215_v28 = vshrl.u32 %v1194_v34, 16  ;;  %v1218_v44 = vshll.u32 %v1194_v34, 16  ;;  %v1134_v30 = vmax.f32 %v1118_v27, 0.0 }
 0x131   : > { %v1049_v38 = vpop.f32.mrf.mxu2 }
 0x132   : > { %v1079_v41 = vadd.f32 %v1049_v38, %v821_v20  ;;  %v1217_v47 = vrot.slane %v1215_v28, 7  ;;  %v1150_v6 = vpack.c.bf16 %v1134_v30, %v1134_v30 }
 0x134   : > { %v1099_v48 = vmul.f32 %v2932_v52, %v1079_v41  ;;  %v1220_v51 = vor.u32 %v1218_v44, %v1217_v47  ;;  %v1285_v55 = vsel %vm2945_vm8, %v1217_v47, 0  ;;  %v1182_v19 = vunpack.c.l.b16 %v1150_v6 }
 0x135   : > { %v1647_v59 = vrot.slane %v1285_v55, 1  ;;  %v1340_v12 = vshll.u32 %v1285_v55, 16 }
 0x136   : > { %v1119_v56 = vadd.f32 %v2938_v60, %v1099_v48  ;;  %v1277_v58 = vsel %vm2945_vm8, 0, %v1220_v51  ;;  %v830_v48 = vpop.f32.mrf.mxu3 }
 0x137   : > { %1592 = vmatmul.bf16.gmra.mxu0 %v1277_v58  ;;  %v1646_v57 = vrot.slane %v1277_v58, 1  ;;  %v1335_v61 = vshll.u32 %v1277_v58, 16  ;;  %v1333_v54 = vshrl.u32 %v1277_v58, 16  ;;  %v1342_v17 = vrot.slane %v1340_v12, 1 }
 0x138   : > { %v1135_v9 = vmax.f32 %v1119_v56, 0.0 }
 0x139   : > { %v1052_v10 = vpop.f32.mrf.mxu2  ;;  %v1648_v11 = vsel %vm1639_vm9, %v1646_v57, %v1647_v59  ;;  %v1337_v25 = vrot.slane %v1335_v61, 1  ;;  %v829_v57 = vadd.f32 %v828_v14, %v2906_v53  ;;  %v831_v14 = vadd.f32 %v830_v48, %v2912_v8 }
 0x13a   : > { %v1151_v4 = vpack.c.bf16 %v1135_v9, %v1135_v9  ;;  %v1080_v13 = vadd.f32 %v1052_v10, %v824_v1  ;;  %1755 = vmatmul.bf16.gmra.mxu1 %v1648_v11 }
 0x13b   : > { %v1338_v15 = vor.u32 %v1337_v25, %v1333_v54 }
 0x13c   : > { %v1183_v21 = vunpack.c.l.b16 %v1151_v4  ;;  %v1100_v5 = vmul.f32 %v2932_v52, %v1080_v13 }
 0x13d   : > { %v1343_v26 = vsel %vm1307_vm10, %v1338_v15, %v1342_v17 }
 0x13e   : > { %v1195_v24 = vpack.c.b16 %v1183_v21, %v1182_v19  ;;  %1495 = vmatmul.bf16.gmra.mxu3 %v1343_v26  ;;  %v1120_v7 = vadd.f32 %v2938_v60, %v1100_v5  ;;  %v833_v53 = vpop.f32.mrf.mxu3 }
 0x13f   : > { %v834_v48 = vadd.f32 %v833_v53, %v2917_v16 }
 0x140   : > { %v1222_v34 = vshrl.u32 %v1195_v24, 16  ;;  %v1225_v38 = vshll.u32 %v1195_v24, 16  ;;  %v1136_v41 = vmax.f32 %v1120_v7, 0.0 }
 0x141   : > { %v1054_v20 = vpop.f32.mrf.mxu2 }
 0x142   : > { %v1081_v27 = vadd.f32 %v1054_v20, %v826_v0  ;;  %v1224_v28 = vrot.slane %v1222_v34, 7  ;;  %v1152_v59 = vpack.c.bf16 %v1136_v41, %v1136_v41 }
 0x144   : > { %v1101_v47 = vmul.f32 %v2932_v52, %v1081_v27  ;;  %v1227_v44 = vor.u32 %v1225_v38, %v1224_v28  ;;  %v1286_v30 = vsel %vm2945_vm8, %v1224_v28, 0  ;;  %v1184_v4 = vunpack.c.l.b16 %v1152_v59 }
 0x145   : > { %v1650_v55 = vrot.slane %v1286_v30, 1  ;;  %v1352_v58 = vshll.u32 %v1286_v30, 16 }
 0x146   : > { %v1121_v51 = vadd.f32 %v2938_v60, %v1101_v47  ;;  %v1278_v31 = vsel %vm2945_vm8, 0, %v1227_v44 }
 0x147   : > { %1597 = vmatmul.bf16.gmra.mxu0 %v1278_v31  ;;  %v1649_v29 = vrot.slane %v1278_v31, 1  ;;  %v1347_v56 = vshll.u32 %v1278_v31, 16  ;;  %v1345_v6 = vshrl.u32 %v1278_v31, 16  ;;  %v1354_v25 = vrot.slane %v1352_v58, 1 }
 0x148   : > { %v1137_v61 = vmax.f32 %v1121_v51, 0.0 }
 0x149   : > { %v1057_v12 = vpop.f32.mrf.mxu2  ;;  %v1651_v1 = vsel %vm1639_vm9, %v1649_v29, %v1650_v55  ;;  %v1349_v9 = vrot.slane %v1347_v56, 1  ;;  %v835_v29 = vpop.f32.mrf.mxu3 }
 0x14a   : > { %v1153_v10 = vpack.c.bf16 %v1137_v61, %v1137_v61  ;;  %v1082_v11 = vadd.f32 %v1057_v12, %v829_v57  ;;  %1760 = vmatmul.bf16.gmra.mxu1 %v1651_v1 }
 0x14b   : > { %v1350_v54 = vor.u32 %v1349_v9, %v1345_v6 }
 0x14c   : > { %v1185_v13 = vunpack.c.l.b16 %v1153_v10  ;;  %v1102_v15 = vmul.f32 %v2932_v52, %v1082_v11 }
 0x14d   : > { %v1355_v17 = vsel %vm1307_vm10, %v1350_v54, %v1354_v25  ;;  %v836_v54 = vadd.f32 %v835_v29, %v2923_v33 }
 0x14e   : > { %v1196_v19 = vpack.c.b16 %v1185_v13, %v1184_v4  ;;  %1500 = vmatmul.bf16.gmra.mxu3 %v1355_v17  ;;  %v1122_v21 = vadd.f32 %v2938_v60, %v1102_v15 }
 0x150   : > { %v1229_v5 = vshrl.u32 %v1196_v19, 16  ;;  %v1232_v7 = vshll.u32 %v1196_v19, 16  ;;  %v1138_v34 = vmax.f32 %v1122_v21, 0.0 }
 0x151   : > { %v1059_v26 = vpop.f32.mrf.mxu2  ;;  %v838_v53 = vpop.f32.mrf.mxu3 }
 0x152   : > { %v1083_v24 = vadd.f32 %v1059_v26, %v831_v14  ;;  %v1231_v0 = vrot.slane %v1229_v5, 7  ;;  %v1154_v51 = vpack.c.bf16 %v1138_v34, %v1138_v34 }
 0x154   : > { %v1103_v20 = vmul.f32 %v2932_v52, %v1083_v24  ;;  %v1234_v27 = vor.u32 %v1232_v7, %v1231_v0  ;;  %v1287_v28 = vsel %vm2945_vm8, %v1231_v0, 0  ;;  %v1186_v6 = vunpack.c.l.b16 %v1154_v51 }
 0x155   : > { %v1653_v47 = vrot.slane %v1287_v28, 1  ;;  %v1364_v30 = vshll.u32 %v1287_v28, 16 }
 0x156   : > { %v1123_v38 = vadd.f32 %v2938_v60, %v1103_v20  ;;  %v1279_v41 = vsel %vm2945_vm8, 0, %v1234_v27  ;;  %v839_v27 = vadd.f32 %v838_v53, %v2925_v18 }
 0x157   : > { %1602 = vmatmul.bf16.gmra.mxu0 %v1279_v41  ;;  %v1652_v8 = vrot.slane %v1279_v41, 1  ;;  %v1359_v44 = vshll.u32 %v1279_v41, 16  ;;  %v1357_v58 = vshrl.u32 %v1279_v41, 16  ;;  %v1366_v1 = vrot.slane %v1364_v30, 1 }
 0x158   : > { %v1139_v31 = vmax.f32 %v1123_v38, 0.0 }
 0x159   : > { %v1062_v55 = vpop.f32.mrf.mxu2  ;;  %v1654_v56 = vsel %vm1639_vm9, %v1652_v8, %v1653_v47  ;;  %v1361_v57 = vrot.slane %v1359_v44, 1 }
 0x15a   : > { %v1155_v59 = vpack.c.bf16 %v1139_v31, %v1139_v31  ;;  %v1084_v61 = vadd.f32 %v1062_v55, %v834_v48  ;;  %1765 = vmatmul.bf16.gmra.mxu1 %v1654_v56 }
 0x15b   : > { %v1362_v12 = vor.u32 %v1361_v57, %v1357_v58  ;;  %v840_v58 = vpop.f32.mrf.mxu3 }
 0x15c   : > { %v1187_v9 = vunpack.c.l.b16 %v1155_v59  ;;  %v1104_v10 = vmul.f32 %v2932_v52, %v1084_v61  ;;  %v841_v59 = vadd.f32 %v840_v58, %v2927_v40 }
 0x15d   : > { %v1367_v11 = vsel %vm1307_vm10, %v1362_v12, %v1366_v1 }
 0x15e   : > { %v1197_v16 = vpack.c.b16 %v1187_v9, %v1186_v6  ;;  %1505 = vmatmul.bf16.gmra.mxu3 %v1367_v11  ;;  %v1124_v25 = vadd.f32 %v2938_v60, %v1104_v10 }
 0x160   : > { %v1236_v4 = vshrl.u32 %v1197_v16, 16  ;;  %v1239_v19 = vshll.u32 %v1197_v16, 16  ;;  %v1140_v14 = vmax.f32 %v1124_v25, 0.0 }
 0x161   : > { %v1064_v13 = vpop.f32.mrf.mxu2 }
 0x162   : > { %v1085_v15 = vadd.f32 %v1064_v13, %v836_v54  ;;  %v1238_v17 = vrot.slane %v1236_v4, 7  ;;  %v1156_v28 = vpack.c.bf16 %v1140_v14, %v1140_v14 }
 0x164   : > { %v1105_v21 = vmul.f32 %v2932_v52, %v1085_v15  ;;  %v1241_v5 = vor.u32 %v1239_v19, %v1238_v17  ;;  %v1288_v26 = vsel %vm2945_vm8, %v1238_v17, 0  ;;  %v1188_v29 = vunpack.c.l.b16 %v1156_v28 }
 0x165   : > { %v1656_v7 = vrot.slane %v1288_v26, 1  ;;  %v1376_v20 = vshll.u32 %v1288_v26, 16 }
 0x166   : > { %v1125_v24 = vadd.f32 %v2938_v60, %v1105_v21  ;;  %v1280_v33 = vsel %vm2945_vm8, 0, %v1241_v5 }
 0x167   : > { %1607 = vmatmul.bf16.gmra.mxu0 %v1280_v33  ;;  %v1655_v0 = vrot.slane %v1280_v33, 1  ;;  %v1371_v34 = vshll.u32 %v1280_v33, 16  ;;  %v1369_v47 = vshrl.u32 %v1280_v33, 16  ;;  %v1378_v31 = vrot.slane %v1376_v20, 1 }
 0x168   : > { %v1141_v38 = vmax.f32 %v1125_v24, 0.0 }
 0x169   : > { %v1067_v41 = vpop.f32.mrf.mxu2  ;;  %v1657_v8 = vsel %vm1639_vm9, %v1655_v0, %v1656_v7  ;;  %v1373_v44 = vrot.slane %v1371_v34, 1 }
 0x16a   : > { %v1157_v30 = vpack.c.bf16 %v1141_v38, %v1141_v38  ;;  %v1086_v48 = vadd.f32 %v1067_v41, %v839_v27  ;;  %1770 = vmatmul.bf16.gmra.mxu1 %v1657_v8 }
 0x16b   : > { %v1374_v51 = vor.u32 %v1373_v44, %v1369_v47 }
 0x16c   : > { %v1189_v55 = vunpack.c.l.b16 %v1157_v30  ;;  %v1106_v56 = vmul.f32 %v2932_v52, %v1086_v48 }
 0x16d   : > { %v1379_v57 = vsel %vm1307_vm10, %v1374_v51, %v1378_v31 }
 0x16e   : > { %v1198_v18 = vpack.c.b16 %v1189_v55, %v1188_v29  ;;  %1510 = vmatmul.bf16.gmra.mxu3 %v1379_v57  ;;  %v1126_v61 = vadd.f32 %v2938_v60, %v1106_v56 }
 0x170   : > { %v1243_v12 = vshrl.u32 %v1198_v18, 16  ;;  %v1246_v10 = vshll.u32 %v1198_v18, 16  ;;  %v1142_v11 = vmax.f32 %v1126_v61, 0.0 }
 0x171   : > { %v1069_v1 = vpop.f32.mrf.mxu2 }
 0x172   : > { %v1087_v6 = vadd.f32 %v1069_v1, %v841_v59  ;;  %v1245_v9 = vrot.slane %v1243_v12, 7  ;;  %v1158_v53 = vpack.c.bf16 %v1142_v11, %v1142_v11  ;;  %v3034_v1 = vld [vmem:[%s3149_s5] ss:$0 sm:$0xff]  ;;  %v1802_v11 = vunpack.c.l.bf16 %v2773_v62 }
 0x174   : > { %v1107_v16 = vmul.f32 %v2932_v52, %v1087_v6  ;;  %v1248_v54 = vor.u32 %v1246_v10, %v1245_v9  ;;  %v1289_v25 = vsel %vm2945_vm8, %v1245_v9, 0  ;;  %v1190_v0 = vunpack.c.l.b16 %v1158_v53  ;;  %v3039_v9 = vld [vmem:[%s3150_s6] ss:$0 sm:$0xff] }
 0x175   : > { %v1659_v15 = vrot.slane %v1289_v25, 1  ;;  %v1388_v19 = vshll.u32 %v1289_v25, 16  ;;  %v1803_v53 = vunpack.c.l.bf16 %v2777_v63 }
 0x176   : > { %v1127_v4 = vadd.f32 %v2938_v60, %v1107_v16  ;;  %v1281_v13 = vsel %vm2945_vm8, 0, %v1248_v54 }
 0x177   : > { %1612 = vmatmul.bf16.gmra.mxu0 %v1281_v13  ;;  %v1658_v40 = vrot.slane %v1281_v13, 1  ;;  %v1383_v17 = vshll.u32 %v1281_v13, 16  ;;  %v1381_v5 = vshrl.u32 %v1281_v13, 16  ;;  %v1390_v33 = vrot.slane %v1388_v19, 1 }
 0x178   : > { %v1143_v14 = vmax.f32 %v1127_v4, 0.0 }
 0x179   : > { %v1660_v21 = vsel %vm1639_vm9, %v1658_v40, %v1659_v15  ;;  %v1385_v52 = vrot.slane %v1383_v17, 1 }
 0x17a   : > { %v1159_v26 = vpack.c.bf16 %v1143_v14, %v1143_v14  ;;  %1775 = vmatmul.bf16.gmra.mxu1 %v1660_v21 }
 0x17b   : > { %v1386_v24 = vor.u32 %v1385_v52, %v1381_v5 }
 0x17c   : > { %v1191_v60 = vunpack.c.l.b16 %v1159_v26 }
 0x17d   : > { %v1391_v7 = vsel %vm1307_vm10, %v1386_v24, %v1390_v33 }
 0x17e   : > { %v1199_v34 = vpack.c.b16 %v1191_v60, %v1190_v0  ;;  %1515 = vmatmul.bf16.gmra.mxu3 %v1391_v7  ;;  %v1804_v60 = vunpack.c.l.bf16 %v2807_v49 }
 0x180   : > { %v1250_v20 = vshrl.u32 %v1199_v34, 16  ;;  %v1253_v28 = vshll.u32 %v1199_v34, 16 }
 0x182   : > { %v1252_v27 = vrot.slane %v1250_v20, 7 }
 0x184   : > { %v1255_v38 = vor.u32 %v1253_v28, %v1252_v27  ;;  %v1290_v41 = vsel %vm2945_vm8, %v1252_v27, 0 }
 0x185   : > { %v1662_v44 = vrot.slane %v1290_v41, 1  ;;  %v1400_v48 = vshll.u32 %v1290_v41, 16 }
 0x186   : > { %v1282_v8 = vsel %vm2945_vm8, 0, %v1255_v38 }
 0x187   : > { %1617 = vmatmul.bf16.gmra.mxu0 %v1282_v8  ;;  %v1661_v47 = vrot.slane %v1282_v8, 1  ;;  %v1395_v30 = vshll.u32 %v1282_v8, 16  ;;  %v1393_v31 = vshrl.u32 %v1282_v8, 16  ;;  %v1402_v56 = vrot.slane %v1400_v48, 1 }
 0x189   : > { %v1663_v51 = vsel %vm1639_vm9, %v1661_v47, %v1662_v44  ;;  %v1397_v29 = vrot.slane %v1395_v30, 1  ;;  %v1805_v47 = vunpack.c.l.bf16 %v2811_v50 }
 0x18a   : > { %1780 = vmatmul.bf16.gmra.mxu1 %v1663_v51 }
 0x18b   : > { %v1398_v55 = vor.u32 %v1397_v29, %v1393_v31 }
 0x18d   : > { %v1403_v58 = vsel %vm1307_vm10, %v1398_v55, %v1402_v56 }
 0x18e   : > { %1520 = vmatmul.bf16.gmra.mxu3 %v1403_v58  ;;  %v1806_v58 = vunpack.c.l.bf16 %v2844_v32 }
 0x194   : > { %v1583_v57 = vpop.f32.mrf.mxu0 }
 0x197   : > { %v1746_v39 = vpop.f32.mrf.mxu1 }
 0x19c   : > { %v1585_v18 = vpop.f32.mrf.mxu0 }
 0x19f   : > { %v1748_v59 = vpop.f32.mrf.mxu1 }
 0x1a1   : > { %v1486_v61 = vpop.f32.mrf.mxu3 }
 0x1a2   : > { %v1584_v12 = vadd.f32 %v1583_v57, %v1486_v61 }
 0x1a4   : > { %v1786_v6 = vadd.f32 %v1746_v39, %v1584_v12  ;;  %v1588_v10 = vpop.f32.mrf.mxu0 }
 0x1a6   : > { %v1822_v16 = vmul.f32 %v3034_v1, %v1786_v6 }
 0x1a7   : > { %v1751_v54 = vpop.f32.mrf.mxu1 }
 0x1a8   : > { %v1842_v25 = vadd.f32 %v3039_v9, %v1822_v16 }
 0x1a9   : > { %v1488_v4 = vpop.f32.mrf.mxu3 }
 0x1aa   : > { %v1858_v13 = vadd.f32 %v1842_v25, %v1802_v11  ;;  %v1586_v40 = vadd.f32 %v1585_v18, %v1488_v4  ;;  %v1807_v11 = vunpack.c.l.bf16 %v2848_v35 }
 0x1ac   : > { %v1874_v15 = vmax.f32 %v1858_v13, 0.0  ;;  %v1787_v17 = vadd.f32 %v1748_v59, %v1586_v40  ;;  %v1590_v19 = vpop.f32.mrf.mxu0 }
 0x1ae   : > { %1890 = vst [vmem:[%s3048_s15] sm:$0xff] %v1874_v15  ;;  %v1823_v62 = vmul.f32 %v3034_v1, %v1787_v17 }
 0x1af   : > { %v1753_v14 = vpop.f32.mrf.mxu1 }
 0x1b0   : > { %v1843_v21 = vadd.f32 %v3039_v9, %v1823_v62 }
 0x1b1   : > { %v1491_v5 = vpop.f32.mrf.mxu3 }
 0x1b2   : > { %v1859_v52 = vadd.f32 %v1843_v21, %v1803_v53  ;;  %v1589_v26 = vadd.f32 %v1588_v10, %v1491_v5 }
 0x1b4   : > { %v1875_v24 = vmax.f32 %v1859_v52, 0.0  ;;  %v1788_v33 = vadd.f32 %v1751_v54, %v1589_v26  ;;  %v1593_v0 = vpop.f32.mrf.mxu0 }
 0x1b6   : > { %1891 = vst [vmem:[%s3048_s15 + $0x8] sm:$0xff] %v1875_v24  ;;  %v1824_v63 = vmul.f32 %v3034_v1, %v1788_v33  ;;  %v1809_v33 = vunpack.c.l.bf16 %v2869_v23 }
 0x1b7   : > { %v1756_v7 = vpop.f32.mrf.mxu1 }
 0x1b8   : > { %v1844_v34 = vadd.f32 %v3039_v9, %v1824_v63 }
 0x1b9   : > { %v1493_v20 = vpop.f32.mrf.mxu3 }
 0x1ba   : > { %v1860_v27 = vadd.f32 %v1844_v34, %v1804_v60  ;;  %v1591_v28 = vadd.f32 %v1590_v19, %v1493_v20  ;;  %v1808_v19 = vunpack.c.l.bf16 %v2865_v22 }
 0x1bc   : > { %v1876_v38 = vmax.f32 %v1860_v27, 0.0  ;;  %v1789_v41 = vadd.f32 %v1753_v14, %v1591_v28  ;;  %v1595_v8 = vpop.f32.mrf.mxu0  ;;  %v1810_v28 = vunpack.c.l.bf16 %v2678_v36 }
 0x1be   : > { %1892 = vst [vmem:[%s3048_s15 + $0x10] sm:$0xff] %v1876_v38  ;;  %v1825_v44 = vmul.f32 %v3034_v1, %v1789_v41 }
 0x1bf   : > { %v1758_v30 = vpop.f32.mrf.mxu1 }
 0x1c0   : > { %v1845_v49 = vadd.f32 %v3039_v9, %v1825_v44 }
 0x1c1   : > { %v1496_v48 = vpop.f32.mrf.mxu3 }
 0x1c2   : > { %v1861_v51 = vadd.f32 %v1845_v49, %v1805_v47  ;;  %v1594_v31 = vadd.f32 %v1593_v0, %v1496_v48 }
 0x1c4   : > { %v1877_v29 = vmax.f32 %v1861_v51, 0.0  ;;  %v1790_v55 = vadd.f32 %v1756_v7, %v1594_v31  ;;  %v1598_v56 = vpop.f32.mrf.mxu0  ;;  %v1811_v51 = vunpack.c.l.bf16 %v2682_v37 }
 0x1c6   : > { %1893 = vst [vmem:[%s3048_s15 + $0x18] sm:$0xff] %v1877_v29  ;;  %v1826_v57 = vmul.f32 %v3034_v1, %v1790_v55 }
 0x1c7   : > { %v1761_v39 = vpop.f32.mrf.mxu1 }
 0x1c8   : > { %v1846_v50 = vadd.f32 %v3039_v9, %v1826_v57 }
 0x1c9   : > { %v1498_v18 = vpop.f32.mrf.mxu3 }
 0x1ca   : > { %v1862_v59 = vadd.f32 %v1846_v50, %v1806_v58  ;;  %v1596_v61 = vadd.f32 %v1595_v8, %v1498_v18  ;;  %v1812_v18 = vunpack.c.l.bf16 %v2716_v2 }
 0x1cc   : > { %v1878_v12 = vmax.f32 %v1862_v59, 0.0  ;;  %v1791_v6 = vadd.f32 %v1758_v30, %v1596_v61  ;;  %v1600_v10 = vpop.f32.mrf.mxu0 }
 0x1ce   : > { %1894 = vst [vmem:[%s3048_s15 + $0x20] sm:$0xff] %v1878_v12  ;;  %v1827_v16 = vmul.f32 %v3034_v1, %v1791_v6 }
 0x1cf   : > { %v1763_v54 = vpop.f32.mrf.mxu1 }
 0x1d0   : > { %v1847_v32 = vadd.f32 %v3039_v9, %v1827_v16 }
 0x1d1   : > { %v1501_v25 = vpop.f32.mrf.mxu3 }
 0x1d2   : > { %v1863_v4 = vadd.f32 %v1847_v32, %v1807_v11  ;;  %v1599_v13 = vadd.f32 %v1598_v56, %v1501_v25  ;;  %v1813_v32 = vunpack.c.l.bf16 %v2720_v3 }
 0x1d4   : > { %v1879_v40 = vmax.f32 %v1863_v4, 0.0  ;;  %v1792_v15 = vadd.f32 %v1761_v39, %v1599_v13  ;;  %v1603_v17 = vpop.f32.mrf.mxu0 }
 0x1d6   : > { %1895 = vst [vmem:[%s3048_s15 + $0x28] sm:$0xff] %v1879_v40  ;;  %v1828_v53 = vmul.f32 %v3034_v1, %v1792_v15 }
 0x1d7   : > { %v1766_v62 = vpop.f32.mrf.mxu1 }
 0x1d8   : > { %v1848_v35 = vadd.f32 %v3039_v9, %v1828_v53  ;;  %v1814_v53 = vunpack.c.l.bf16 %v2754_v42 }
 0x1d9   : > { %v1503_v14 = vpop.f32.mrf.mxu3 }
 0x1da   : > { %v1864_v21 = vadd.f32 %v1848_v35, %v1808_v19  ;;  %v1601_v5 = vadd.f32 %v1600_v10, %v1503_v14 }
 0x1dc   : > { %v1880_v52 = vmax.f32 %v1864_v21, 0.0  ;;  %v1793_v26 = vadd.f32 %v1763_v54, %v1601_v5  ;;  %v1605_v24 = vpop.f32.mrf.mxu0 }
 0x1de   : > { %1896 = vst [vmem:[%s3048_s15 + $0x30] sm:$0xff] %v1880_v52  ;;  %v1829_v0 = vmul.f32 %v3034_v1, %v1793_v26 }
 0x1df   : > { %v1768_v60 = vpop.f32.mrf.mxu1 }
 0x1e0   : > { %v1849_v22 = vadd.f32 %v3039_v9, %v1829_v0 }
 0x1e1   : > { %v1506_v63 = vpop.f32.mrf.mxu3 }
 0x1e2   : > { %v1865_v7 = vadd.f32 %v1849_v22, %v1809_v33  ;;  %v1604_v34 = vadd.f32 %v1603_v17, %v1506_v63 }
 0x1e4   : > { %v1881_v20 = vmax.f32 %v1865_v7, 0.0  ;;  %v1794_v27 = vadd.f32 %v1766_v62, %v1604_v34  ;;  %v1608_v41 = vpop.f32.mrf.mxu0 }
 0x1e6   : > { %1897 = vst [vmem:[%s3048_s15 + $0x38] sm:$0xff] %v1881_v20  ;;  %v1830_v38 = vmul.f32 %v3034_v1, %v1794_v27  ;;  %v1816_v27 = vunpack.c.l.bf16 %v2799_v45  ;;  %v1817_v45 = vunpack.c.l.bf16 %v2803_v46 }
 0x1e7   : > { %v1771_v8 = vpop.f32.mrf.mxu1 }
 0x1e8   : > { %v1850_v23 = vadd.f32 %v3039_v9, %v1830_v38 }
 0x1e9   : > { %v1508_v47 = vpop.f32.mrf.mxu3 }
 0x1ea   : > { %v1866_v44 = vadd.f32 %v1850_v23, %v1810_v28  ;;  %v1606_v30 = vadd.f32 %v1605_v24, %v1508_v47  ;;  %v1815_v24 = vunpack.c.l.bf16 %v2758_v43 }
 0x1ec   : > { %v1882_v49 = vmax.f32 %v1866_v44, 0.0  ;;  %v1795_v48 = vadd.f32 %v1768_v60, %v1606_v30  ;;  %v1610_v29 = vpop.f32.mrf.mxu0 }
 0x1ee   : > { %1898 = vst [vmem:[%s3048_s15 + $0x40] sm:$0xff] %v1882_v49  ;;  %v1831_v31 = vmul.f32 %v3034_v1, %v1795_v48 }
 0x1ef   : > { %v1773_v57 = vpop.f32.mrf.mxu1 }
 0x1f0   : > { %v1851_v36 = vadd.f32 %v3039_v9, %v1831_v31 }
 0x1f1   : > { %v1511_v55 = vpop.f32.mrf.mxu3 }
 0x1f2   : > { %v1867_v56 = vadd.f32 %v1851_v36, %v1811_v51  ;;  %v1609_v58 = vadd.f32 %v1608_v41, %v1511_v55 }
 0x1f4   : > { %v1883_v39 = vmax.f32 %v1867_v56, 0.0  ;;  %v1796_v50 = vadd.f32 %v1771_v8, %v1609_v58  ;;  %v1613_v10 = vpop.f32.mrf.mxu0 }
 0x1f6   : > { %1899 = vst [vmem:[%s3048_s15 + $0x48] sm:$0xff] %v1883_v39  ;;  %v1832_v59 = vmul.f32 %v3034_v1, %v1796_v50 }
 0x1f7   : > { %v1776_v54 = vpop.f32.mrf.mxu1 }
 0x1f8   : > { %v1852_v37 = vadd.f32 %v3039_v9, %v1832_v59 }
 0x1f9   : > { %v1513_v61 = vpop.f32.mrf.mxu3 }
 0x1fa   : > { %v1868_v12 = vadd.f32 %v1852_v37, %v1812_v18  ;;  %v1611_v6 = vadd.f32 %v1610_v29, %v1513_v61 }
 0x1fc   : > { %v1884_v11 = vmax.f32 %v1868_v12, 0.0  ;;  %v1797_v16 = vadd.f32 %v1773_v57, %v1611_v6  ;;  %v1615_v19 = vpop.f32.mrf.mxu0 }
 0x1fe   : > { %1900 = vst [vmem:[%s3048_s15 + $0x50] sm:$0xff] %v1884_v11  ;;  %v1833_v25 = vmul.f32 %v3034_v1, %v1797_v16 }
 0x1ff   : > { %v1778_v35 = vpop.f32.mrf.mxu1 }
 0x200   : > { %v1853_v2 = vadd.f32 %v3039_v9, %v1833_v25 }
 0x201   : > { %v1516_v4 = vpop.f32.mrf.mxu3 }
 0x202   : > { %v1869_v13 = vadd.f32 %v1853_v2, %v1813_v32  ;;  %v1614_v40 = vadd.f32 %v1613_v10, %v1516_v4 }
 0x204   : > { %v1885_v15 = vmax.f32 %v1869_v13, 0.0  ;;  %v1798_v17 = vadd.f32 %v1776_v54, %v1614_v40  ;;  %v1618_v0 = vpop.f32.mrf.mxu0 }
 0x206   : > { %1901 = vst [vmem:[%s3048_s15 + $0x58] sm:$0xff] %v1885_v15  ;;  %v1834_v62 = vmul.f32 %v3034_v1, %v1798_v17 }
 0x207   : > { %v1781_v60 = vpop.f32.mrf.mxu1 }
 0x208   : > { %v1854_v3 = vadd.f32 %v3039_v9, %v1834_v62 }
 0x209   : > { %v1518_v14 = vpop.f32.mrf.mxu3 }
 0x20a   : > { %v1870_v21 = vadd.f32 %v1854_v3, %v1814_v53  ;;  %v1616_v5 = vadd.f32 %v1615_v19, %v1518_v14 }
 0x20c   : > { %v1886_v52 = vmax.f32 %v1870_v21, 0.0  ;;  %v1799_v26 = vadd.f32 %v1778_v35, %v1616_v5  ;;  %v1620_v38 = vpop.f32.mrf.mxu0 }
 0x20e   : > { %1902 = vst [vmem:[%s3048_s15 + $0x60] sm:$0xff] %v1886_v52  ;;  %v1835_v33 = vmul.f32 %v3034_v1, %v1799_v26 }
 0x20f   : > { %v1783_v47 = vpop.f32.mrf.mxu1 }
 0x210   : > { %v1855_v42 = vadd.f32 %v3039_v9, %v1835_v33 }
 0x211   : > { %v1521_v22 = vpop.f32.mrf.mxu3 }
 0x212   : > { %v1871_v63 = vadd.f32 %v1855_v42, %v1815_v24  ;;  %v1619_v7 = vadd.f32 %v1618_v0, %v1521_v22 }
 0x214   : > { %v1887_v34 = vmax.f32 %v1871_v63, 0.0  ;;  %v1800_v20 = vadd.f32 %v1781_v60, %v1619_v7 }
 0x216   : > { %1903 = vst [vmem:[%s3048_s15 + $0x68] sm:$0xff] %v1887_v34  ;;  %v1836_v43 = vmul.f32 %v3034_v1, %v1800_v20 }
 0x218   : > { %v1856_v28 = vadd.f32 %v3039_v9, %v1836_v43 }
 0x219   : > { %v1523_v41 = vpop.f32.mrf.mxu3 }
 0x21a   : > { %v1872_v23 = vadd.f32 %v1856_v28, %v1816_v27  ;;  %v1621_v8 = vadd.f32 %v1620_v38, %v1523_v41 }
 0x21c   : > { %v1888_v44 = vmax.f32 %v1872_v23, 0.0  ;;  %v1801_v30 = vadd.f32 %v1783_v47, %v1621_v8 }
 0x21e   : > { %1904 = vst [vmem:[%s3048_s15 + $0x70] sm:$0xff] %v1888_v44  ;;  %v1837_v49 = vmul.f32 %v3034_v1, %v1801_v30 }
 0x220   : > { %v1857_v48 = vadd.f32 %v3039_v9, %v1837_v49 }
 0x222   : > { %v1873_v51 = vadd.f32 %v1857_v48, %v1817_v45 }
 0x224   : > { %v1889_v31 = vmax.f32 %v1873_v51, 0.0 }
 0x226   : > { %1905 = vst [vmem:[%s3048_s15 + $0x78] sm:$0xff] %v1889_v31 }
 0x227   : > { %2466 = shalt.err (!%p2463_p8)
}
 0x228   : > { %s2510_s13 = smov 128   ;;  %s2511_s15 = smov 8  }
 0x229   : > { %2355 = dma.vmem_to_hbm [thread:$0]  (%p2590_p5), %s1921_s20, 2048, %s1923_s22, %s1907_s28, %s2510_s13, %s2510_s13, %s2511_s15  }
 0x22a PF: > { %p2367_p9 = scmp.ge.s32.totalorder %s2505_s27, 2  ;;  %s1937_s17 = sand.u32 1, %s2493_s24  }
 0x22b   : > { %s1938_s19 = scalar_lea.sflag [#allocation4], %s1937_s17 }
 0x22c   : > { %p2362_p10 = pnand %p2367_p9, %p2594_p6 }
 0x22e   : > { %p2363_p11 = pneg %p2362_p10 }
 0x230   : > { %2488 = dma.done.wait (%p2363_p11), %s1938_s19, 2048  }
 0x231   : > { %2490 = vsyncadd (%p2363_p11), %s1938_s19, 4294965248  ;;  %p18_p12 = scmp.ge.s32.totalorder %s2577_s30, 4   ;;  %s3160_s24 = smov %s2497_s25 }
 0x232   : > { %s3161_s25 = smov %s2501_s26  ;;  %s3162_s26 = smov %s2588_s10 }
 0x233   : > { %s3163_s27 = smov %s2577_s30  ;;  %20 = sbr.rel (!%p18_p12) target bundleno = 4 (0x4), region = 92 }
 0x238   :  { %1944 = vsyncpa [#allocation3], 1 }
 0x239   :  { %1946 = vsyncpa [#allocation3 + $0x1], 1 }
 0x23a   :  { %1947 = vsyncpa [#allocation4], 1 }
 0x23b   :  { %1949 = vsyncpa [#allocation4 + $0x1], 1 }

</bundles_post_ra>
